<compile_context>
chip_gen: v5e
topology: v5e:2x2
jax: 0.10.0
libtpu: 0.0.40
codegen_flags: <defaults>
</compile_context>

<pallas_src>
import functools

import jax
import jax.numpy as jnp
from jax import lax
from jax.experimental import pallas as pl
from jax.experimental.pallas import tpu as pltpu
import numpy as np

EPS = 1e-5   # InstanceNorm2d default eps
K = 7        # Conv2d kernel size
PAD = 3      # Conv2d padding (reflect)


def init_block_kernel(x_ref, w_ref, mask_ref, o_ref, xstack_ref, *, Wp, Cip, inv_count):
    """Per-(image, Co-tile) fused 7x7 conv + InstanceNorm + ReLU.

    x_ref:      (1, Cip, Lp)       reflect-padded image, channels zero-padded to Cip
                                   (multiple of 8), row-major flattened over (Hp, Wp),
                                   zero-padded to Lp (multiple of 128).
    w_ref:      (Co_t, K*K*Cip)    dense weight tile; column (kh*K+kw)*Cip + ci.
    mask_ref:   (1, Lp)            1.0 at the H*W valid output positions (q = h*Wp + w).
    o_ref:      (1, Co_t, Lp)      lane-dense output (garbage at masked-off positions,
                                   discarded by the wrapper).
    xstack_ref: (K*K*Cip, Lp) VMEM scratch holding the stacked rolled taps.
    """
    x = x_ref[0]                                    # (Cip, Lp) f32
    lp = x.shape[-1]

    # Build the stacked RHS: tap t = kh*K + kw occupies rows [t*Cip, (t+1)*Cip).
    # Each write is a full sublane-aligned slab (Cip is a multiple of 8).
    for kh in range(K):
        for kw in range(K):
            s = kh * Wp + kw                        # static flat shift for this tap
            xs = x if s == 0 else pltpu.roll(x, shift=(lp - s) % lp, axis=1)
            t = kh * K + kw
            xstack_ref[pl.ds(t * Cip, Cip), :] = xs

    # One deep MXU matmul: (Co_t, K*K*Cip) x (K*K*Cip, Lp) -> (Co_t, Lp), f32 acc.
    # Accumulation stays inside the MXU (no per-tap (Co,Lp) read-modify-write).
    acc = jnp.dot(w_ref[...], xstack_ref[...], preferred_element_type=jnp.float32)
    # NOTE: conv bias intentionally omitted: InstanceNorm2d(affine=False) subtracts the
    # per-channel spatial mean, so a per-channel bias added before it is a no-op.

    # Single-pass masked InstanceNorm over the valid spatial positions.
    # (var = E[y^2] - mean^2 in f32 is adequate at these sizes; switch to a centered /
    # streaming formulation when spatial tiling is added for very large H*W.)
    m = mask_ref[...]                               # (1, Lp)
    ym = acc * m                                    # mask applied once, reused
    s1 = jnp.sum(ym, axis=1, keepdims=True)         # (Co_t, 1)  sum(y)
    s2 = jnp.sum(ym * acc, axis=1, keepdims=True)   # (Co_t, 1)  sum(y^2)
    mean = s1 * inv_count
    var = s2 * inv_count - mean * mean
    yn = (acc - mean) * lax.rsqrt(var + EPS)
    o_ref[0] = jnp.maximum(yn, 0.0).astype(o_ref.dtype)   # ReLU


def g_initial_block_forward(x_nchw, weight, *, co_tile=None):
    """weight: PyTorch Conv2d layout (Co, Ci, K, K). Bias dropped (no-op before IN)."""
    N, Ci, H, W = x_nchw.shape
    Co = weight.shape[0]
    Hp, Wp = H + 2 * PAD, W + 2 * PAD
    Cip = ((Ci + 7) // 8) * 8                       # channel pad -> aligned tap slabs

    # Glue (plain JAX): reflect pad + flatten + channel/lane zero-pad. No HBM im2col.
    x_pad = jnp.pad(x_nchw, ((0, 0), (0, 0), (PAD, PAD), (PAD, PAD)), mode="reflect")
    L = Hp * Wp
    Lp = ((L + 127) // 128) * 128                   # lane-dense flat length
    x_flat = jnp.pad(x_pad.reshape(N, Ci, L),
                     ((0, 0), (0, Cip - Ci), (0, Lp - L)))

    # Dense weight matrix (Co, K*K*Cip): column (kh*K+kw)*Cip + ci = weight[:, ci, kh, kw]
    # (zero columns for the padded channels).
    w4 = jnp.transpose(weight, (0, 2, 3, 1))                 # (Co, K, K, Ci)
    w4 = jnp.pad(w4, ((0, 0), (0, 0), (0, 0), (0, Cip - Ci)))
    w_mat = w4.reshape(Co, K * K * Cip)
    D = K * K * Cip

    # Valid-position mask over the padded flat grid (q = h*Wp + w with h < H, w < W).
    q = np.arange(Lp)
    mask = (((q // Wp) < H) & ((q % Wp) < W)).astype(np.float32).reshape(1, Lp)
    mask = jnp.asarray(mask)

    # Co tiling: extra "parallel" axis so both v7x TensorCores are busy even at N=1.
    if co_tile is None:
        co_tile = 32 if (Co % 32 == 0 and Co > 32) else Co
    n_co = Co // co_tile

    kernel = functools.partial(init_block_kernel, Wp=Wp, Cip=Cip,
                               inv_count=1.0 / float(H * W))
    out_flat = pl.pallas_call(
        kernel,
        out_shape=jax.ShapeDtypeStruct((N, Co, Lp), x_nchw.dtype),
        grid_spec=pltpu.PrefetchScalarGridSpec(
            num_scalar_prefetch=0,
            grid=(N, n_co),
            in_specs=[
                pl.BlockSpec((1, Cip, Lp), lambda n, c: (n, 0, 0)),
                pl.BlockSpec((co_tile, D), lambda n, c: (c, 0)),
                pl.BlockSpec((1, Lp), lambda n, c: (0, 0)),
            ],
            out_specs=pl.BlockSpec((1, co_tile, Lp), lambda n, c: (n, c, 0)),
            scratch_shapes=[pltpu.VMEM((D, Lp), jnp.float32)],
        ),
        compiler_params=pltpu.CompilerParams(
            dimension_semantics=("parallel", "parallel"),
            vmem_limit_bytes=64 * 1024 * 1024,
        ),
    )(x_flat, w_mat, mask)

    # Lane-dense (N, Co, Lp) -> NCHW via cheap reshape + narrow slice (no transpose).
    out = out_flat[:, :, : H * Wp].reshape(N, Co, H, Wp)[:, :, :, :W]
    return out


def ref_forward(x, w, b):
    """Pure-JAX reference: reflect-pad Conv2d(+bias) -> InstanceNorm2d -> ReLU."""
    xp = jnp.pad(x, ((0, 0), (0, 0), (PAD, PAD), (PAD, PAD)), mode="reflect")
    y = lax.conv_general_dilated(
        xp, w, window_strides=(1, 1), padding="VALID",
        dimension_numbers=("NCHW", "OIHW", "NCHW"),
        precision=lax.Precision.HIGHEST)
    y = y + b[None, :, None, None]
    mean = y.mean(axis=(2, 3), keepdims=True)
    var = ((y - mean) ** 2).mean(axis=(2, 3), keepdims=True)
    y = (y - mean) * lax.rsqrt(var + EPS)
    return jnp.maximum(y, 0.0)


if __name__ == "__main__":
    key = jax.random.PRNGKey(0)
    N, Ci, H, W = 2, 4, 16, 16
    Co = 64                                          # module default out_channels
    k1, k2, k3 = jax.random.split(key, 3)
    x = jax.random.normal(k1, (N, Ci, H, W), dtype=jnp.float32)
    # PyTorch Conv2d weight layout (Co, Ci, K, K) and bias (Co,)
    weight = jax.random.normal(k2, (Co, Ci, K, K), dtype=jnp.float32) * 0.1
    bias = jax.random.normal(k3, (Co,), dtype=jnp.float32) * 0.1

    out = jax.block_until_ready(g_initial_block_forward(x, weight))
    assert out.shape == (N, Co, H, W), out.shape

    # Reference includes the bias; the kernel drops it (cancelled by InstanceNorm).
    ref = ref_forward(x, weight, bias)
    np.testing.assert_allclose(np.asarray(out), np.asarray(ref), atol=3e-4, rtol=3e-4)
    print("KERNEL_OK")
</pallas_src>

<mosaic_0001>
module attributes {stable_mosaic.version = 11 : i64} {
  func.func @init_block_kernel(%arg0: i32, %arg1: i32, %arg2: memref<1x8x512xf32, #tpu.memory_space<vmem>>, %arg3: memref<32x392xf32, #tpu.memory_space<vmem>>, %arg4: memref<1x512xf32, #tpu.memory_space<vmem>>, %arg5: memref<1x32x512xf32, #tpu.memory_space<vmem>>, %arg6: memref<392x512xf32, #tpu.memory_space<vmem>>) attributes {dimension_semantics = [#tpu.dimension_semantics<parallel>, #tpu.dimension_semantics<parallel>], iteration_bounds = array<i64: 2, 2>, scalar_prefetch = 0 : i64, scratch_operands = 1 : i64, tpu.core_type = #tpu.core_type<tc>, window_params = [{transform_indices = @transform_0, window_bounds = array<i64: 1, 8, 512>}, {transform_indices = @transform_1, window_bounds = array<i64: 32, 392>}, {pipeline_mode = #tpu.pipeline_mode<synchronous>, transform_indices = @transform_2, window_bounds = array<i64: 1, 512>}, {transform_indices = @transform_3, window_bounds = array<i64: 1, 32, 512>}]} {
    %c0 = arith.constant 0 : index
    %c0_0 = arith.constant 0 : index
    %c0_1 = arith.constant 0 : index
    %0 = vector.load %arg2[%c0, %c0_0, %c0_1] : memref<1x8x512xf32, #tpu.memory_space<vmem>>, vector<1x8x512xf32>
    %1 = vector.shape_cast %0 : vector<1x8x512xf32> to vector<8x512xf32>
    %c0_2 = arith.constant 0 : index
    %c0_3 = arith.constant 0 : index
    %2 = vector.load %arg6[%c0_2, %c0_3] : memref<392x512xf32, #tpu.memory_space<vmem>>, vector<8x512xf32>
    tpu.vector_store %arg6[%c0_2, %c0_3], %1 {strides = array<i32>} : memref<392x512xf32, #tpu.memory_space<vmem>>, vector<8x512xf32>,
    %c511_i32 = arith.constant 511 : i32
    %3 = tpu.dynamic_rotate %1 by %c511_i32 dim 1 : vector<8x512xf32>, i32 -> vector<8x512xf32>
    %c8 = arith.constant 8 : index
    %c0_4 = arith.constant 0 : index
    %4 = vector.load %arg6[%c8, %c0_4] : memref<392x512xf32, #tpu.memory_space<vmem>>, vector<8x512xf32>
    tpu.vector_store %arg6[%c8, %c0_4], %3 {strides = array<i32>} : memref<392x512xf32, #tpu.memory_space<vmem>>, vector<8x512xf32>,
    %c510_i32 = arith.constant 510 : i32
    %5 = tpu.dynamic_rotate %1 by %c510_i32 dim 1 : vector<8x512xf32>, i32 -> vector<8x512xf32>
    %c16 = arith.constant 16 : index
    %c0_5 = arith.constant 0 : index
    %6 = vector.load %arg6[%c16, %c0_5] : memref<392x512xf32, #tpu.memory_space<vmem>>, vector<8x512xf32>
    tpu.vector_store %arg6[%c16, %c0_5], %5 {strides = array<i32>} : memref<392x512xf32, #tpu.memory_space<vmem>>, vector<8x512xf32>,
    %c509_i32 = arith.constant 509 : i32
    %7 = tpu.dynamic_rotate %1 by %c509_i32 dim 1 : vector<8x512xf32>, i32 -> vector<8x512xf32>
    %c24 = arith.constant 24 : index
    %c0_6 = arith.constant 0 : index
    %8 = vector.load %arg6[%c24, %c0_6] : memref<392x512xf32, #tpu.memory_space<vmem>>, vector<8x512xf32>
    tpu.vector_store %arg6[%c24, %c0_6], %7 {strides = array<i32>} : memref<392x512xf32, #tpu.memory_space<vmem>>, vector<8x512xf32>,
    %c508_i32 = arith.constant 508 : i32
    %9 = tpu.dynamic_rotate %1 by %c508_i32 dim 1 : vector<8x512xf32>, i32 -> vector<8x512xf32>
    %c32 = arith.constant 32 : index
    %c0_7 = arith.constant 0 : index
    %10 = vector.load %arg6[%c32, %c0_7] : memref<392x512xf32, #tpu.memory_space<vmem>>, vector<8x512xf32>
    tpu.vector_store %arg6[%c32, %c0_7], %9 {strides = array<i32>} : memref<392x512xf32, #tpu.memory_space<vmem>>, vector<8x512xf32>,
    %c507_i32 = arith.constant 507 : i32
    %11 = tpu.dynamic_rotate %1 by %c507_i32 dim 1 : vector<8x512xf32>, i32 -> vector<8x512xf32>
    %c40 = arith.constant 40 : index
    %c0_8 = arith.constant 0 : index
    %12 = vector.load %arg6[%c40, %c0_8] : memref<392x512xf32, #tpu.memory_space<vmem>>, vector<8x512xf32>
    tpu.vector_store %arg6[%c40, %c0_8], %11 {strides = array<i32>} : memref<392x512xf32, #tpu.memory_space<vmem>>, vector<8x512xf32>,
    %c506_i32 = arith.constant 506 : i32
    %13 = tpu.dynamic_rotate %1 by %c506_i32 dim 1 : vector<8x512xf32>, i32 -> vector<8x512xf32>
    %c48 = arith.constant 48 : index
    %c0_9 = arith.constant 0 : index
    %14 = vector.load %arg6[%c48, %c0_9] : memref<392x512xf32, #tpu.memory_space<vmem>>, vector<8x512xf32>
    tpu.vector_store %arg6[%c48, %c0_9], %13 {strides = array<i32>} : memref<392x512xf32, #tpu.memory_space<vmem>>, vector<8x512xf32>,
    %c490_i32 = arith.constant 490 : i32
    %15 = tpu.dynamic_rotate %1 by %c490_i32 dim 1 : vector<8x512xf32>, i32 -> vector<8x512xf32>
    %c56 = arith.constant 56 : index
    %c0_10 = arith.constant 0 : index
    %16 = vector.load %arg6[%c56, %c0_10] : memref<392x512xf32, #tpu.memory_space<vmem>>, vector<8x512xf32>
    tpu.vector_store %arg6[%c56, %c0_10], %15 {strides = array<i32>} : memref<392x512xf32, #tpu.memory_space<vmem>>, vector<8x512xf32>,
    %c489_i32 = arith.constant 489 : i32
    %17 = tpu.dynamic_rotate %1 by %c489_i32 dim 1 : vector<8x512xf32>, i32 -> vector<8x512xf32>
    %c64 = arith.constant 64 : index
    %c0_11 = arith.constant 0 : index
    %18 = vector.load %arg6[%c64, %c0_11] : memref<392x512xf32, #tpu.memory_space<vmem>>, vector<8x512xf32>
    tpu.vector_store %arg6[%c64, %c0_11], %17 {strides = array<i32>} : memref<392x512xf32, #tpu.memory_space<vmem>>, vector<8x512xf32>,
    %c488_i32 = arith.constant 488 : i32
    %19 = tpu.dynamic_rotate %1 by %c488_i32 dim 1 : vector<8x512xf32>, i32 -> vector<8x512xf32>
    %c72 = arith.constant 72 : index
    %c0_12 = arith.constant 0 : index
    %20 = vector.load %arg6[%c72, %c0_12] : memref<392x512xf32, #tpu.memory_space<vmem>>, vector<8x512xf32>
    tpu.vector_store %arg6[%c72, %c0_12], %19 {strides = array<i32>} : memref<392x512xf32, #tpu.memory_space<vmem>>, vector<8x512xf32>,
    %c487_i32 = arith.constant 487 : i32
    %21 = tpu.dynamic_rotate %1 by %c487_i32 dim 1 : vector<8x512xf32>, i32 -> vector<8x512xf32>
    %c80 = arith.constant 80 : index
    %c0_13 = arith.constant 0 : index
    %22 = vector.load %arg6[%c80, %c0_13] : memref<392x512xf32, #tpu.memory_space<vmem>>, vector<8x512xf32>
    tpu.vector_store %arg6[%c80, %c0_13], %21 {strides = array<i32>} : memref<392x512xf32, #tpu.memory_space<vmem>>, vector<8x512xf32>,
    %c486_i32 = arith.constant 486 : i32
    %23 = tpu.dynamic_rotate %1 by %c486_i32 dim 1 : vector<8x512xf32>, i32 -> vector<8x512xf32>
    %c88 = arith.constant 88 : index
    %c0_14 = arith.constant 0 : index
    %24 = vector.load %arg6[%c88, %c0_14] : memref<392x512xf32, #tpu.memory_space<vmem>>, vector<8x512xf32>
    tpu.vector_store %arg6[%c88, %c0_14], %23 {strides = array<i32>} : memref<392x512xf32, #tpu.memory_space<vmem>>, vector<8x512xf32>,
    %c485_i32 = arith.constant 485 : i32
    %25 = tpu.dynamic_rotate %1 by %c485_i32 dim 1 : vector<8x512xf32>, i32 -> vector<8x512xf32>
    %c96 = arith.constant 96 : index
    %c0_15 = arith.constant 0 : index
    %26 = vector.load %arg6[%c96, %c0_15] : memref<392x512xf32, #tpu.memory_space<vmem>>, vector<8x512xf32>
    tpu.vector_store %arg6[%c96, %c0_15], %25 {strides = array<i32>} : memref<392x512xf32, #tpu.memory_space<vmem>>, vector<8x512xf32>,
    %c484_i32 = arith.constant 484 : i32
    %27 = tpu.dynamic_rotate %1 by %c484_i32 dim 1 : vector<8x512xf32>, i32 -> vector<8x512xf32>
    %c104 = arith.constant 104 : index
    %c0_16 = arith.constant 0 : index
    %28 = vector.load %arg6[%c104, %c0_16] : memref<392x512xf32, #tpu.memory_space<vmem>>, vector<8x512xf32>
    tpu.vector_store %arg6[%c104, %c0_16], %27 {strides = array<i32>} : memref<392x512xf32, #tpu.memory_space<vmem>>, vector<8x512xf32>,
    %c468_i32 = arith.constant 468 : i32
    %29 = tpu.dynamic_rotate %1 by %c468_i32 dim 1 : vector<8x512xf32>, i32 -> vector<8x512xf32>
    %c112 = arith.constant 112 : index
    %c0_17 = arith.constant 0 : index
    %30 = vector.load %arg6[%c112, %c0_17] : memref<392x512xf32, #tpu.memory_space<vmem>>, vector<8x512xf32>
    tpu.vector_store %arg6[%c112, %c0_17], %29 {strides = array<i32>} : memref<392x512xf32, #tpu.memory_space<vmem>>, vector<8x512xf32>,
    %c467_i32 = arith.constant 467 : i32
    %31 = tpu.dynamic_rotate %1 by %c467_i32 dim 1 : vector<8x512xf32>, i32 -> vector<8x512xf32>
    %c120 = arith.constant 120 : index
    %c0_18 = arith.constant 0 : index
    %32 = vector.load %arg6[%c120, %c0_18] : memref<392x512xf32, #tpu.memory_space<vmem>>, vector<8x512xf32>
    tpu.vector_store %arg6[%c120, %c0_18], %31 {strides = array<i32>} : memref<392x512xf32, #tpu.memory_space<vmem>>, vector<8x512xf32>,
    %c466_i32 = arith.constant 466 : i32
    %33 = tpu.dynamic_rotate %1 by %c466_i32 dim 1 : vector<8x512xf32>, i32 -> vector<8x512xf32>
    %c128 = arith.constant 128 : index
    %c0_19 = arith.constant 0 : index
    %34 = vector.load %arg6[%c128, %c0_19] : memref<392x512xf32, #tpu.memory_space<vmem>>, vector<8x512xf32>
    tpu.vector_store %arg6[%c128, %c0_19], %33 {strides = array<i32>} : memref<392x512xf32, #tpu.memory_space<vmem>>, vector<8x512xf32>,
    %c465_i32 = arith.constant 465 : i32
    %35 = tpu.dynamic_rotate %1 by %c465_i32 dim 1 : vector<8x512xf32>, i32 -> vector<8x512xf32>
    %c136 = arith.constant 136 : index
    %c0_20 = arith.constant 0 : index
    %36 = vector.load %arg6[%c136, %c0_20] : memref<392x512xf32, #tpu.memory_space<vmem>>, vector<8x512xf32>
    tpu.vector_store %arg6[%c136, %c0_20], %35 {strides = array<i32>} : memref<392x512xf32, #tpu.memory_space<vmem>>, vector<8x512xf32>,
    %c464_i32 = arith.constant 464 : i32
    %37 = tpu.dynamic_rotate %1 by %c464_i32 dim 1 : vector<8x512xf32>, i32 -> vector<8x512xf32>
    %c144 = arith.constant 144 : index
    %c0_21 = arith.constant 0 : index
    %38 = vector.load %arg6[%c144, %c0_21] : memref<392x512xf32, #tpu.memory_space<vmem>>, vector<8x512xf32>
    tpu.vector_store %arg6[%c144, %c0_21], %37 {strides = array<i32>} : memref<392x512xf32, #tpu.memory_space<vmem>>, vector<8x512xf32>,
    %c463_i32 = arith.constant 463 : i32
    %39 = tpu.dynamic_rotate %1 by %c463_i32 dim 1 : vector<8x512xf32>, i32 -> vector<8x512xf32>
    %c152 = arith.constant 152 : index
    %c0_22 = arith.constant 0 : index
    %40 = vector.load %arg6[%c152, %c0_22] : memref<392x512xf32, #tpu.memory_space<vmem>>, vector<8x512xf32>
    tpu.vector_store %arg6[%c152, %c0_22], %39 {strides = array<i32>} : memref<392x512xf32, #tpu.memory_space<vmem>>, vector<8x512xf32>,
    %c462_i32 = arith.constant 462 : i32
    %41 = tpu.dynamic_rotate %1 by %c462_i32 dim 1 : vector<8x512xf32>, i32 -> vector<8x512xf32>
    %c160 = arith.constant 160 : index
    %c0_23 = arith.constant 0 : index
    %42 = vector.load %arg6[%c160, %c0_23] : memref<392x512xf32, #tpu.memory_space<vmem>>, vector<8x512xf32>
    tpu.vector_store %arg6[%c160, %c0_23], %41 {strides = array<i32>} : memref<392x512xf32, #tpu.memory_space<vmem>>, vector<8x512xf32>,
    %c446_i32 = arith.constant 446 : i32
    %43 = tpu.dynamic_rotate %1 by %c446_i32 dim 1 : vector<8x512xf32>, i32 -> vector<8x512xf32>
    %c168 = arith.constant 168 : index
    %c0_24 = arith.constant 0 : index
    %44 = vector.load %arg6[%c168, %c0_24] : memref<392x512xf32, #tpu.memory_space<vmem>>, vector<8x512xf32>
    tpu.vector_store %arg6[%c168, %c0_24], %43 {strides = array<i32>} : memref<392x512xf32, #tpu.memory_space<vmem>>, vector<8x512xf32>,
    %c445_i32 = arith.constant 445 : i32
    %45 = tpu.dynamic_rotate %1 by %c445_i32 dim 1 : vector<8x512xf32>, i32 -> vector<8x512xf32>
    %c176 = arith.constant 176 : index
    %c0_25 = arith.constant 0 : index
    %46 = vector.load %arg6[%c176, %c0_25] : memref<392x512xf32, #tpu.memory_space<vmem>>, vector<8x512xf32>
    tpu.vector_store %arg6[%c176, %c0_25], %45 {strides = array<i32>} : memref<392x512xf32, #tpu.memory_space<vmem>>, vector<8x512xf32>,
    %c444_i32 = arith.constant 444 : i32
    %47 = tpu.dynamic_rotate %1 by %c444_i32 dim 1 : vector<8x512xf32>, i32 -> vector<8x512xf32>
    %c184 = arith.constant 184 : index
    %c0_26 = arith.constant 0 : index
    %48 = vector.load %arg6[%c184, %c0_26] : memref<392x512xf32, #tpu.memory_space<vmem>>, vector<8x512xf32>
    tpu.vector_store %arg6[%c184, %c0_26], %47 {strides = array<i32>} : memref<392x512xf32, #tpu.memory_space<vmem>>, vector<8x512xf32>,
    %c443_i32 = arith.constant 443 : i32
    %49 = tpu.dynamic_rotate %1 by %c443_i32 dim 1 : vector<8x512xf32>, i32 -> vector<8x512xf32>
    %c192 = arith.constant 192 : index
    %c0_27 = arith.constant 0 : index
    %50 = vector.load %arg6[%c192, %c0_27] : memref<392x512xf32, #tpu.memory_space<vmem>>, vector<8x512xf32>
    tpu.vector_store %arg6[%c192, %c0_27], %49 {strides = array<i32>} : memref<392x512xf32, #tpu.memory_space<vmem>>, vector<8x512xf32>,
    %c442_i32 = arith.constant 442 : i32
    %51 = tpu.dynamic_rotate %1 by %c442_i32 dim 1 : vector<8x512xf32>, i32 -> vector<8x512xf32>
    %c200 = arith.constant 200 : index
    %c0_28 = arith.constant 0 : index
    %52 = vector.load %arg6[%c200, %c0_28] : memref<392x512xf32, #tpu.memory_space<vmem>>, vector<8x512xf32>
    tpu.vector_store %arg6[%c200, %c0_28], %51 {strides = array<i32>} : memref<392x512xf32, #tpu.memory_space<vmem>>, vector<8x512xf32>,
    %c441_i32 = arith.constant 441 : i32
    %53 = tpu.dynamic_rotate %1 by %c441_i32 dim 1 : vector<8x512xf32>, i32 -> vector<8x512xf32>
    %c208 = arith.constant 208 : index
    %c0_29 = arith.constant 0 : index
    %54 = vector.load %arg6[%c208, %c0_29] : memref<392x512xf32, #tpu.memory_space<vmem>>, vector<8x512xf32>
    tpu.vector_store %arg6[%c208, %c0_29], %53 {strides = array<i32>} : memref<392x512xf32, #tpu.memory_space<vmem>>, vector<8x512xf32>,
    %c440_i32 = arith.constant 440 : i32
    %55 = tpu.dynamic_rotate %1 by %c440_i32 dim 1 : vector<8x512xf32>, i32 -> vector<8x512xf32>
    %c216 = arith.constant 216 : index
    %c0_30 = arith.constant 0 : index
    %56 = vector.load %arg6[%c216, %c0_30] : memref<392x512xf32, #tpu.memory_space<vmem>>, vector<8x512xf32>
    tpu.vector_store %arg6[%c216, %c0_30], %55 {strides = array<i32>} : memref<392x512xf32, #tpu.memory_space<vmem>>, vector<8x512xf32>,
    %c424_i32 = arith.constant 424 : i32
    %57 = tpu.dynamic_rotate %1 by %c424_i32 dim 1 : vector<8x512xf32>, i32 -> vector<8x512xf32>
    %c224 = arith.constant 224 : index
    %c0_31 = arith.constant 0 : index
    %58 = vector.load %arg6[%c224, %c0_31] : memref<392x512xf32, #tpu.memory_space<vmem>>, vector<8x512xf32>
    tpu.vector_store %arg6[%c224, %c0_31], %57 {strides = array<i32>} : memref<392x512xf32, #tpu.memory_space<vmem>>, vector<8x512xf32>,
    %c423_i32 = arith.constant 423 : i32
    %59 = tpu.dynamic_rotate %1 by %c423_i32 dim 1 : vector<8x512xf32>, i32 -> vector<8x512xf32>
    %c232 = arith.constant 232 : index
    %c0_32 = arith.constant 0 : index
    %60 = vector.load %arg6[%c232, %c0_32] : memref<392x512xf32, #tpu.memory_space<vmem>>, vector<8x512xf32>
    tpu.vector_store %arg6[%c232, %c0_32], %59 {strides = array<i32>} : memref<392x512xf32, #tpu.memory_space<vmem>>, vector<8x512xf32>,
    %c422_i32 = arith.constant 422 : i32
    %61 = tpu.dynamic_rotate %1 by %c422_i32 dim 1 : vector<8x512xf32>, i32 -> vector<8x512xf32>
    %c240 = arith.constant 240 : index
    %c0_33 = arith.constant 0 : index
    %62 = vector.load %arg6[%c240, %c0_33] : memref<392x512xf32, #tpu.memory_space<vmem>>, vector<8x512xf32>
    tpu.vector_store %arg6[%c240, %c0_33], %61 {strides = array<i32>} : memref<392x512xf32, #tpu.memory_space<vmem>>, vector<8x512xf32>,
    %c421_i32 = arith.constant 421 : i32
    %63 = tpu.dynamic_rotate %1 by %c421_i32 dim 1 : vector<8x512xf32>, i32 -> vector<8x512xf32>
    %c248 = arith.constant 248 : index
    %c0_34 = arith.constant 0 : index
    %64 = vector.load %arg6[%c248, %c0_34] : memref<392x512xf32, #tpu.memory_space<vmem>>, vector<8x512xf32>
    tpu.vector_store %arg6[%c248, %c0_34], %63 {strides = array<i32>} : memref<392x512xf32, #tpu.memory_space<vmem>>, vector<8x512xf32>,
    %c420_i32 = arith.constant 420 : i32
    %65 = tpu.dynamic_rotate %1 by %c420_i32 dim 1 : vector<8x512xf32>, i32 -> vector<8x512xf32>
    %c256 = arith.constant 256 : index
    %c0_35 = arith.constant 0 : index
    %66 = vector.load %arg6[%c256, %c0_35] : memref<392x512xf32, #tpu.memory_space<vmem>>, vector<8x512xf32>
    tpu.vector_store %arg6[%c256, %c0_35], %65 {strides = array<i32>} : memref<392x512xf32, #tpu.memory_space<vmem>>, vector<8x512xf32>,
    %c419_i32 = arith.constant 419 : i32
    %67 = tpu.dynamic_rotate %1 by %c419_i32 dim 1 : vector<8x512xf32>, i32 -> vector<8x512xf32>
    %c264 = arith.constant 264 : index
    %c0_36 = arith.constant 0 : index
    %68 = vector.load %arg6[%c264, %c0_36] : memref<392x512xf32, #tpu.memory_space<vmem>>, vector<8x512xf32>
    tpu.vector_store %arg6[%c264, %c0_36], %67 {strides = array<i32>} : memref<392x512xf32, #tpu.memory_space<vmem>>, vector<8x512xf32>,
    %c418_i32 = arith.constant 418 : i32
    %69 = tpu.dynamic_rotate %1 by %c418_i32 dim 1 : vector<8x512xf32>, i32 -> vector<8x512xf32>
    %c272 = arith.constant 272 : index
    %c0_37 = arith.constant 0 : index
    %70 = vector.load %arg6[%c272, %c0_37] : memref<392x512xf32, #tpu.memory_space<vmem>>, vector<8x512xf32>
    tpu.vector_store %arg6[%c272, %c0_37], %69 {strides = array<i32>} : memref<392x512xf32, #tpu.memory_space<vmem>>, vector<8x512xf32>,
    %c402_i32 = arith.constant 402 : i32
    %71 = tpu.dynamic_rotate %1 by %c402_i32 dim 1 : vector<8x512xf32>, i32 -> vector<8x512xf32>
    %c280 = arith.constant 280 : index
    %c0_38 = arith.constant 0 : index
    %72 = vector.load %arg6[%c280, %c0_38] : memref<392x512xf32, #tpu.memory_space<vmem>>, vector<8x512xf32>
    tpu.vector_store %arg6[%c280, %c0_38], %71 {strides = array<i32>} : memref<392x512xf32, #tpu.memory_space<vmem>>, vector<8x512xf32>,
    %c401_i32 = arith.constant 401 : i32
    %73 = tpu.dynamic_rotate %1 by %c401_i32 dim 1 : vector<8x512xf32>, i32 -> vector<8x512xf32>
    %c288 = arith.constant 288 : index
    %c0_39 = arith.constant 0 : index
    %74 = vector.load %arg6[%c288, %c0_39] : memref<392x512xf32, #tpu.memory_space<vmem>>, vector<8x512xf32>
    tpu.vector_store %arg6[%c288, %c0_39], %73 {strides = array<i32>} : memref<392x512xf32, #tpu.memory_space<vmem>>, vector<8x512xf32>,
    %c400_i32 = arith.constant 400 : i32
    %75 = tpu.dynamic_rotate %1 by %c400_i32 dim 1 : vector<8x512xf32>, i32 -> vector<8x512xf32>
    %c296 = arith.constant 296 : index
    %c0_40 = arith.constant 0 : index
    %76 = vector.load %arg6[%c296, %c0_40] : memref<392x512xf32, #tpu.memory_space<vmem>>, vector<8x512xf32>
    tpu.vector_store %arg6[%c296, %c0_40], %75 {strides = array<i32>} : memref<392x512xf32, #tpu.memory_space<vmem>>, vector<8x512xf32>,
    %c399_i32 = arith.constant 399 : i32
    %77 = tpu.dynamic_rotate %1 by %c399_i32 dim 1 : vector<8x512xf32>, i32 -> vector<8x512xf32>
    %c304 = arith.constant 304 : index
    %c0_41 = arith.constant 0 : index
    %78 = vector.load %arg6[%c304, %c0_41] : memref<392x512xf32, #tpu.memory_space<vmem>>, vector<8x512xf32>
    tpu.vector_store %arg6[%c304, %c0_41], %77 {strides = array<i32>} : memref<392x512xf32, #tpu.memory_space<vmem>>, vector<8x512xf32>,
    %c398_i32 = arith.constant 398 : i32
    %79 = tpu.dynamic_rotate %1 by %c398_i32 dim 1 : vector<8x512xf32>, i32 -> vector<8x512xf32>
    %c312 = arith.constant 312 : index
    %c0_42 = arith.constant 0 : index
    %80 = vector.load %arg6[%c312, %c0_42] : memref<392x512xf32, #tpu.memory_space<vmem>>, vector<8x512xf32>
    tpu.vector_store %arg6[%c312, %c0_42], %79 {strides = array<i32>} : memref<392x512xf32, #tpu.memory_space<vmem>>, vector<8x512xf32>,
    %c397_i32 = arith.constant 397 : i32
    %81 = tpu.dynamic_rotate %1 by %c397_i32 dim 1 : vector<8x512xf32>, i32 -> vector<8x512xf32>
    %c320 = arith.constant 320 : index
    %c0_43 = arith.constant 0 : index
    %82 = vector.load %arg6[%c320, %c0_43] : memref<392x512xf32, #tpu.memory_space<vmem>>, vector<8x512xf32>
    tpu.vector_store %arg6[%c320, %c0_43], %81 {strides = array<i32>} : memref<392x512xf32, #tpu.memory_space<vmem>>, vector<8x512xf32>,
    %c396_i32 = arith.constant 396 : i32
    %83 = tpu.dynamic_rotate %1 by %c396_i32 dim 1 : vector<8x512xf32>, i32 -> vector<8x512xf32>
    %c328 = arith.constant 328 : index
    %c0_44 = arith.constant 0 : index
    %84 = vector.load %arg6[%c328, %c0_44] : memref<392x512xf32, #tpu.memory_space<vmem>>, vector<8x512xf32>
    tpu.vector_store %arg6[%c328, %c0_44], %83 {strides = array<i32>} : memref<392x512xf32, #tpu.memory_space<vmem>>, vector<8x512xf32>,
    %c380_i32 = arith.constant 380 : i32
    %85 = tpu.dynamic_rotate %1 by %c380_i32 dim 1 : vector<8x512xf32>, i32 -> vector<8x512xf32>
    %c336 = arith.constant 336 : index
    %c0_45 = arith.constant 0 : index
    %86 = vector.load %arg6[%c336, %c0_45] : memref<392x512xf32, #tpu.memory_space<vmem>>, vector<8x512xf32>
    tpu.vector_store %arg6[%c336, %c0_45], %85 {strides = array<i32>} : memref<392x512xf32, #tpu.memory_space<vmem>>, vector<8x512xf32>,
    %c379_i32 = arith.constant 379 : i32
    %87 = tpu.dynamic_rotate %1 by %c379_i32 dim 1 : vector<8x512xf32>, i32 -> vector<8x512xf32>
    %c344 = arith.constant 344 : index
    %c0_46 = arith.constant 0 : index
    %88 = vector.load %arg6[%c344, %c0_46] : memref<392x512xf32, #tpu.memory_space<vmem>>, vector<8x512xf32>
    tpu.vector_store %arg6[%c344, %c0_46], %87 {strides = array<i32>} : memref<392x512xf32, #tpu.memory_space<vmem>>, vector<8x512xf32>,
    %c378_i32 = arith.constant 378 : i32
    %89 = tpu.dynamic_rotate %1 by %c378_i32 dim 1 : vector<8x512xf32>, i32 -> vector<8x512xf32>
    %c352 = arith.constant 352 : index
    %c0_47 = arith.constant 0 : index
    %90 = vector.load %arg6[%c352, %c0_47] : memref<392x512xf32, #tpu.memory_space<vmem>>, vector<8x512xf32>
    tpu.vector_store %arg6[%c352, %c0_47], %89 {strides = array<i32>} : memref<392x512xf32, #tpu.memory_space<vmem>>, vector<8x512xf32>,
    %c377_i32 = arith.constant 377 : i32
    %91 = tpu.dynamic_rotate %1 by %c377_i32 dim 1 : vector<8x512xf32>, i32 -> vector<8x512xf32>
    %c360 = arith.constant 360 : index
    %c0_48 = arith.constant 0 : index
    %92 = vector.load %arg6[%c360, %c0_48] : memref<392x512xf32, #tpu.memory_space<vmem>>, vector<8x512xf32>
    tpu.vector_store %arg6[%c360, %c0_48], %91 {strides = array<i32>} : memref<392x512xf32, #tpu.memory_space<vmem>>, vector<8x512xf32>,
    %c376_i32 = arith.constant 376 : i32
    %93 = tpu.dynamic_rotate %1 by %c376_i32 dim 1 : vector<8x512xf32>, i32 -> vector<8x512xf32>
    %c368 = arith.constant 368 : index
    %c0_49 = arith.constant 0 : index
    %94 = vector.load %arg6[%c368, %c0_49] : memref<392x512xf32, #tpu.memory_space<vmem>>, vector<8x512xf32>
    tpu.vector_store %arg6[%c368, %c0_49], %93 {strides = array<i32>} : memref<392x512xf32, #tpu.memory_space<vmem>>, vector<8x512xf32>,
    %c375_i32 = arith.constant 375 : i32
    %95 = tpu.dynamic_rotate %1 by %c375_i32 dim 1 : vector<8x512xf32>, i32 -> vector<8x512xf32>
    %c376 = arith.constant 376 : index
    %c0_50 = arith.constant 0 : index
    %96 = vector.load %arg6[%c376, %c0_50] : memref<392x512xf32, #tpu.memory_space<vmem>>, vector<8x512xf32>
    tpu.vector_store %arg6[%c376, %c0_50], %95 {strides = array<i32>} : memref<392x512xf32, #tpu.memory_space<vmem>>, vector<8x512xf32>,
    %c374_i32 = arith.constant 374 : i32
    %97 = tpu.dynamic_rotate %1 by %c374_i32 dim 1 : vector<8x512xf32>, i32 -> vector<8x512xf32>
    %c384 = arith.constant 384 : index
    %c0_51 = arith.constant 0 : index
    %98 = vector.load %arg6[%c384, %c0_51] : memref<392x512xf32, #tpu.memory_space<vmem>>, vector<8x512xf32>
    tpu.vector_store %arg6[%c384, %c0_51], %97 {strides = array<i32>} : memref<392x512xf32, #tpu.memory_space<vmem>>, vector<8x512xf32>,
    %c0_52 = arith.constant 0 : index
    %c0_53 = arith.constant 0 : index
    %99 = vector.load %arg3[%c0_52, %c0_53] : memref<32x392xf32, #tpu.memory_space<vmem>>, vector<32x392xf32>
    %c0_54 = arith.constant 0 : index
    %c0_55 = arith.constant 0 : index
    %100 = vector.load %arg6[%c0_54, %c0_55] : memref<392x512xf32, #tpu.memory_space<vmem>>, vector<392x512xf32>
    %cst = arith.constant dense<0.000000e+00> : vector<32x512xf32>
    %101 = tpu.matmul %99, %100, %cst {dimension_numbers = #tpu.dot_dimension_numbers<[1], [0], [0], [1], [0, 0, 1, 1], [], []>} : vector<32x392xf32>, vector<392x512xf32>, vector<32x512xf32> -> vector<32x512xf32>
    %c0_56 = arith.constant 0 : index
    %c0_57 = arith.constant 0 : index
    %102 = vector.load %arg4[%c0_56, %c0_57] : memref<1x512xf32, #tpu.memory_space<vmem>>, vector<1x512xf32>
    %103 = vector.broadcast %102 : vector<1x512xf32> to vector<32x512xf32>
    %104 = arith.mulf %101, %103 : vector<32x512xf32>
    %cst_58 = arith.constant dense<0.000000e+00> : vector<32xf32>
    %105 = vector.multi_reduction <add>, %104, %cst_58 [1] : vector<32x512xf32> to vector<32xf32>
    %106 = vector.shape_cast %105 : vector<32xf32> to vector<32x1xf32>
    %107 = arith.mulf %104, %101 : vector<32x512xf32>
    %cst_59 = arith.constant dense<0.000000e+00> : vector<32xf32>
    %108 = vector.multi_reduction <add>, %107, %cst_59 [1] : vector<32x512xf32> to vector<32xf32>
    %109 = vector.shape_cast %108 : vector<32xf32> to vector<32x1xf32>
    %cst_60 = arith.constant 3.906250e-03 : f32
    %110 = vector.broadcast %cst_60 : f32 to vector<32x1xf32>
    %111 = arith.mulf %106, %110 : vector<32x1xf32>
    %cst_61 = arith.constant 3.906250e-03 : f32
    %112 = vector.broadcast %cst_61 : f32 to vector<32x1xf32>
    %113 = arith.mulf %109, %112 : vector<32x1xf32>
    %114 = arith.mulf %111, %111 : vector<32x1xf32>
    %115 = arith.subf %113, %114 : vector<32x1xf32>
    %116 = vector.broadcast %111 : vector<32x1xf32> to vector<32x512xf32>
    %117 = arith.subf %101, %116 : vector<32x512xf32>
    %cst_62 = arith.constant 9.99999974E-6 : f32
    %118 = vector.broadcast %cst_62 : f32 to vector<32x1xf32>
    %119 = arith.addf %115, %118 : vector<32x1xf32>
    %120 = math.rsqrt %119 : vector<32x1xf32>
    %121 = vector.broadcast %120 : vector<32x1xf32> to vector<32x512xf32>
    %122 = arith.mulf %117, %121 : vector<32x512xf32>
    %cst_63 = arith.constant 0.000000e+00 : f32
    %123 = vector.broadcast %cst_63 : f32 to vector<32x512xf32>
    %124 = arith.maximumf %122, %123 : vector<32x512xf32>
    %c0_64 = arith.constant 0 : index
    %c0_65 = arith.constant 0 : index
    %c0_66 = arith.constant 0 : index
    %125 = vector.load %arg5[%c0_64, %c0_65, %c0_66] : memref<1x32x512xf32, #tpu.memory_space<vmem>>, vector<1x32x512xf32>
    %126 = vector.shape_cast %125 : vector<1x32x512xf32> to vector<32x512xf32>
    %127 = vector.shape_cast %124 : vector<32x512xf32> to vector<1x32x512xf32>
    tpu.vector_store %arg5[%c0_64, %c0_65, %c0_66], %127 {strides = array<i32>} : memref<1x32x512xf32, #tpu.memory_space<vmem>>, vector<1x32x512xf32>,
    return
  }
  func.func @transform_0(%arg0: i32, %arg1: i32) -> (i32, i32, i32) {
    %c0_i32 = arith.constant 0 : i32
    %c0_i32_0 = arith.constant 0 : i32
    %c0_i32_1 = arith.constant 0 : i32
    return %arg0, %c0_i32, %c0_i32_0 : i32, i32, i32
  }
  func.func @transform_1(%arg0: i32, %arg1: i32) -> (i32, i32) {
    %c0_i32 = arith.constant 0 : i32
    %c0_i32_0 = arith.constant 0 : i32
    return %arg1, %c0_i32 : i32, i32
  }
  func.func @transform_2(%arg0: i32, %arg1: i32) -> (i32, i32) {
    %c0_i32 = arith.constant 0 : i32
    %c0_i32_0 = arith.constant 0 : i32
    %c0_i32_1 = arith.constant 0 : i32
    return %c0_i32, %c0_i32_0 : i32, i32
  }
  func.func @transform_3(%arg0: i32, %arg1: i32) -> (i32, i32, i32) {
    %c0_i32 = arith.constant 0 : i32
    %c0_i32_0 = arith.constant 0 : i32
    return %arg0, %arg1, %c0_i32 : i32, i32, i32
  }
}

</mosaic_0001>

<bundles_post_ra>
// kernel: tpu_custom_call.1
= control target key start
LH: loop header
LB: loop body
LE: loop exit
PB: predicated region body
PF: predicated region fallthrough
CT: control target
= control target key end

     0   :  { %s5236_s0 = inlined_call_operand.hbm [shape: f32[2,8,512], index: 0, kind: input, shape index: {}]   ;;  %s5237_s1 = inlined_call_operand.hbm [shape: f32[64,392], index: 1, kind: input, shape index: {}]   ;;  %s5238_s2 = inlined_call_operand.hbm [shape: f32[1,512], index: 2, kind: input, shape index: {}]   ;;  %s5239_s3 = inlined_call_operand.hbm [shape: f32[2,64,512], index: 3, kind: output, shape index: {}]  }
   0x1   :  { %5418 = sst [smem:[#allocation67_spill]] %s5236_s0 }
   0x2   :  { %5419 = sst [smem:[#allocation68_spill]] %s5238_s2 }
   0x3   :  { %5420 = sst [smem:[#allocation69_spill]] %s5239_s3 }
   0x4   :  { %8 = vsyncpa [#allocation4], 0 }
   0x5   :  { %10 = vsyncpa [#allocation4 + $0x1], 0 }
   0x6   :  { %11 = vsyncpa [#allocation7], 0 }
   0x7   :  { %13 = vsyncpa [#allocation7 + $0x1], 0 }
   0x8   :  { %14 = vsyncpa [#allocation5], 0 }
   0x9   :  { %16 = vsyncpa [#allocation5 + $0x1], 0  ;;  %s3031_s12 = smov 0   ;;  %s3033_s13 = smov 0  }
   0xa   :  { %s3035_s14 = smov 0   ;;  %s3037_s15 = smov 0  }
   0xb   :  { %s3039_s16 = smov 0   ;;  %s3041_s17 = smov 0  }
   0xc   :  { %s3043_s18 = smov 0   ;;  %s3045_s19 = smov 0  }
   0xd   :  { %s3047_s20 = smov 0   ;;  %s3049_s21 = smov 0  }
   0xe   :  { %s3051_s22 = smov 0   ;;  %s3053_s23 = smov 0  }
   0xf   :  { %s3055_s24 = smov 0   ;;  %s3057_s25 = smov 0  }
  0x10 LB: > { %5421 = sst [smem:[#allocation14_spill]] %s2907_s12  ;;  %s3100_s26 = sadd.s32 4294967295, %s2959_s25   ;;  %s2959_s25 = sphi %s3057_s25, %s22_s25   ;;  %s2955_s24 = sphi %s3055_s24, %s5756_s24   ;;  %s2951_s23 = sphi %s3053_s23, %s5755_s23   ;;  %s2947_s22 = sphi %s3051_s22, %s5743_s22   ;;  %s2943_s21 = sphi %s3049_s21, %s5754_s21   ;;  %s2939_s20 = sphi %s3047_s20, %s5753_s20   ;;  %s2935_s19 = sphi %s3045_s19, %s5752_s19   ;;  %s2931_s18 = sphi %s3043_s18, %s5751_s18   ;;  %s2927_s17 = sphi %s3041_s17, %s5750_s17   ;;  %s2923_s16 = sphi %s3039_s16, %s5749_s16   ;;  %s2919_s15 = sphi %s3037_s15, %s5748_s15   ;;  %s2915_s14 = sphi %s3035_s14, %s5747_s14   ;;  %s2911_s13 = sphi %s3033_s13, %s5746_s13   ;;  %s2907_s12 = sphi %s3031_s12, %s5741_s12  }
  0x11   : > { %5422 = sst [smem:[#allocation15_spill]] %s2911_s13  ;;  %s2083_s27 = sadd.s32 4294967294, %s2959_s25  }
  0x12   : > { %5423 = sst [smem:[#allocation16_spill]] %s2943_s21  ;;  %p55_p0 = scmp.eq.s32.totalorder %s3100_s26, 0 }
  0x13   : > { %5424 = sst [smem:[#allocation17_spill]] %s2947_s22  ;;  %p80_p1 = scmp.ne.s32.totalorder %s2923_s16, %s2919_s15 }
  0x14   : > { %5425 = sst [smem:[#allocation18_spill]] %s2955_s24  ;;  %p126_p2 = scmp.ne.s32.totalorder %s2915_s14, %s2911_s13 }
  0x15   : > { %p127_p3 = scmp.eq.s32.totalorder %s3100_s26, 3  ;;  %p3110_p4 = por %p80_p1, %p55_p0 }
  0x16   : > { %p132_p5 = scmp.ne.s32.totalorder %s2911_s13, %s2907_s12  ;;  %p133_p7 = scmp.eq.s32.totalorder %s2083_s27, 3 }
  0x17   : > { %s5426_s28 = scalar_select %p3110_p4, 1, 0 }
  0x18   : > { %p3116_p6 = por %p127_p3, %p126_p2  ;;  %p2084_p8 = scmp.ge.s32.totalorder %s2959_s25, 1 }
  0x19   : > { %5427 = sst [smem:[#allocation19_spill]] %s5426_s28  ;;  %p140_p9 = scmp.lt.s32.totalorder %s2959_s25, 5 }
  0x1a   : > { %s5428_s29 = scalar_select %p3116_p6, 1, 0 }
  0x1b   : > { %p3122_p10 = por %p133_p7, %p132_p5  ;;  %p3126_p11 = pnand %p2084_p8, %p140_p9 }
  0x1c   : > { %5429 = sst [smem:[#allocation20_spill]] %s5428_s29  ;;  %s2961_s8 = smov [#allocation8]  }
  0x1d   : > { %s5430_s30 = scalar_select %p3122_p10, 1, 0 }
  0x1e   : > { %s5433_s2 = sld [smem:[#allocation68_spill]]  ;;  %p2152_p12 = pneg %p3126_p11 }
  0x1f   : > { %5431 = sst [smem:[#allocation21_spill]] %s5430_s30  ;;  %s154_s9 = sshll.u32 %s2961_s8, 4  ;;  %s155_s9 = int_to_ptr.vmem [resolvable:$true] %s154_s9 }
  0x20   : > { %p2153_p13 = pnand %p2152_p12, %p55_p0  ;;  %s31_s10 = sadd.s32 1, %s2951_s23 }
  0x21   : > { %s34_s11 = sadd.s32 1, %s2955_s24  ;;  %p32_p1 = scmp.ge.s32.totalorder %s31_s10, 2 }
  0x22   : > { %s41_s15 = sadd.s32 1, %s2939_s20  ;;  %p48_p2 = scmp.ne.s32.totalorder %s2939_s20, %s2935_s19 }
  0x23   : > { %p49_p3 = scmp.eq.s32.totalorder %s2959_s25, 0  ;;  %s5758_s10 = smov (%p32_p1, %s31_s10), 0 }
  0x24   : > { %s152_s7 = sshll.u32 %s5433_s2, 4  ;;  %5434 = sst [smem:[#allocation22_spill]] %s5758_s10  ;;  %s153_s7 = int_to_ptr.hbm [resolvable:$true] %s152_s7 }
  0x25   : > { %2155 = dma.hbm_to_vmem [thread:$0]  (!%p2153_p13), %s153_s7, 64, %s155_s9, [#allocation7]  }
  0x26   : > { %s5760_s11 = smov (!%p32_p1, %s34_s11), %s2955_s24  ;;  %p3148_p5 = por %p49_p3, %p48_p2 }
  0x27   : > { %p54_p7 = scmp.ne.s32.totalorder %s2935_s19, %s2931_s18  ;;  %p36_p8 = scmp.ge.s32.totalorder %s5760_s11, 2 }
  0x28   : > { %s64_s5 = ssub.s32 %s2951_s23, %s5758_s10  ;;  %s67_s7 = sadd.s32 1, %s2927_s17 }
  0x29   : > { %p3158_p9 = por %p55_p0, %p54_p7  ;;  %p65_p12 = scmp.eq.s32.totalorder %s64_s5, 0 }
  0x2a   : > { %s5762_s11 = smov (%p36_p8, %s5760_s11), 0  ;;  %p74_p13 = scmp.ne.s32.totalorder %s2927_s17, %s2923_s16 }
  0x2b   : > { %5437 = sst [smem:[#allocation23_spill]] %s5762_s11  ;;  %s38_s8 = ssub.s32 %s2955_s24, %s5762_s11 }
  0x2c   : > { %s116_s9 = sadd.s32 1, %s2915_s14  ;;  %p39_p1 = scmp.eq.s32.totalorder %s38_s8, 0 }
  0x2d   : > { %p3172_p2 = por %p74_p13, %p49_p3  ;;  %s113_s30 = sor.u32 %s64_s5, %s38_s8 }
  0x2e   : > { %s3177_s2 = scalar_select %p65_p12, %s2927_s17, %s67_s7  }
  0x2f   : > { %s3180_s10 = scalar_select %p39_p1, %s2939_s20, %s41_s15  }
  0x30   : > { %5439 = sst [smem:[#allocation24_spill]] %s3177_s2  ;;  %p2168_p7 = scmp.lt.s32.totalorder %s2959_s25, 4 }
  0x31   : > { %p114_p8 = scmp.eq.s32.totalorder %s113_s30, 0  ;;  %s165_s11 = sand.u32 1, %s2939_s20  }
  0x32   : > { %s2087_s12 = sshll.u32 %s165_s11, 5  ;;  %s2122_s3 = sshll.u32 %s2955_s24, 5 }
  0x33   : > { %s3185_s29 = scalar_select %p114_p8, %s2915_s14, %s116_s9  }
  0x34   : > { %s5440_s0 = sld [smem:[#allocation67_spill]]  ;;  %s169_s2 = scalar_lea.vmem [#allocation3], %s2087_s12 }
  0x35   : > { %s178_s13 = sshll.u32 %s169_s2, 4  ;;  %p2157_p3 = pnand %p2168_p7, %p3148_p5  ;;  %s179_s13 = int_to_ptr.vmem [resolvable:$true] %s178_s13 }
  0x36   : > { %p3199_p12 = pnand %p2168_p7, %p3172_p2  ;;  %s185_s15 = sand.u32 1, %s2959_s25  }
  0x37   : > { %s166_s5 = scalar_lea.sflag [#allocation4], %s165_s11  ;;  %s187_s21 = sand.u32 1, %s2927_s17  }
  0x38   : > { %s2124_s12 = sshll.u32 %s2951_s23, 7  ;;  %s186_s18 = scalar_lea.sflag [#allocation7], %s185_s15 }
  0x39   : > { %s195_s8 = scalar_lea.hbm %s5237_s1, %s2124_s12  ;;  %s2963_s24 = smov 32  }
  0x3a   : > { %s174_s7 = scalar_lea.hbm %s5440_s0, %s2122_s3  ;;  %s2090_s3 = sshll.u32 %s187_s21, 7 }
  0x3b   : > { %s176_s28 = sshll.u32 %s174_s7, 4  ;;  %s196_s27 = sshll.u32 %s195_s8, 4  ;;  %s177_s28 = int_to_ptr.hbm [resolvable:$true] %s176_s28  ;;  %s197_s27 = int_to_ptr.hbm [resolvable:$true] %s196_s27 }
  0x3c   : > { %2159 = dma.hbm_to_vmem [thread:$0]  (!%p2157_p3), %s177_s28, 512, %s179_s13, %s166_s5  }
  0x3d   : > { %s189_s9 = scalar_lea.vmem [#allocation6], %s2090_s3  ;;  %s2962_s0 = smov 512  }
  0x3e   : > { %s198_s7 = sshll.u32 %s189_s9, 4  ;;  %210 = sbr.rel (%p3126_p11) target bundleno = 826 (0x33a), region = 32  ;;  %s199_s7 = int_to_ptr.vmem [resolvable:$true] %s198_s7 }
  0x3f   : > { %2162 = dma.hbm_to_vmem [thread:$0]  (!%p3199_p12), %s197_s27, 2048, %s199_s7, %s186_s18, %s2962_s0, %s2962_s0, %s2963_s24  }
  0x43   : > { %s212_s13 = sand.u32 1, %s2935_s19  }
  0x44   : > { %s2095_s28 = sshll.u32 %s212_s13, 5  ;;  %s213_s11 = scalar_lea.sflag [#allocation4], %s212_s13 }
  0x45   : > { %s3214_s5 = scalar_lea.vmem [#allocation3], %s2095_s28 }
  0x46   : > { %2890 = dma.done.wait (%p3158_p9), %s213_s11, 512  }
  0x47   : > { %2892 = vsyncadd (%p3158_p9), %s213_s11, 4294966784  ;;  %s222_s30 = sand.u32 1, %s3100_s26   ;;  %s224_s0 = sand.u32 1, %s2923_s16  }
  0x48   : > { %s2096_s24 = sshll.u32 %s224_s0, 7  ;;  %s223_s4 = scalar_lea.sflag [#allocation7], %s222_s30 }
  0x49   : > { %s3222_s21 = scalar_lea.vmem [#allocation6], %s2096_s24 }
  0x4a   : > { %2894 = dma.done.wait (%p3110_p4), %s223_s4, 2048  }
  0x4b   : > { %2896 = vsyncadd (%p3110_p4), %s223_s4, 4294965248 }
  0x4c   : > { %2898 = dma.done.wait (%p55_p0), [#allocation7], 64  }
  0x4d   : > { %2900 = vsyncadd (%p55_p0), [#allocation7], 4294967232  ;;  %v3233_v0 = vld [vmem:[%s3214_s5] sm:$0xff]  ;;  %v263_v1 = vld [vmem:[%s3214_s5 + $0x8] sm:$0xff]  ;;  %s2964_s6 = smov 125   ;;  %s2965_s3 = smov 126   ;;  %v278_v8 = vlaneseq }
  0x4e   : > { %v3237_v2 = vpack.i.bf16 %v263_v1, %v3233_v0  ;;  %s2966_s12 = smov 127   ;;  %v3243_v3 = vld [vmem:[%s3214_s5 + $0x10] sm:$0xff]  ;;  %v3246_v4 = vld [vmem:[%s3214_s5 + $0x18] sm:$0xff]  ;;  %s2967_s26 = smov 123  }
  0x4f   : > { %v3250_v5 = vpack.i.bf16 %v3246_v4, %v3243_v3  ;;  %s2968_s2 = smov 124   ;;  %s2969_s22 = smov 122   ;;  %v2488_v6 = vpack.i.bf16 %v3243_v3, %v263_v1  ;;  %v3295_v9 = vand.u32 127, %v278_v8 }
  0x50   : > { %2354 = vrot.lane.b32.xlu2 %v3237_v2, %s2964_s6  ;;  %2344 = vrot.lane.b32.xlu1 %v3237_v2, %s2965_s3  ;;  %s2970_s8 = smov 105   ;;  %s2971_s27 = smov 106  }
  0x51   : > { %2334 = vrot.lane.b32.xlu0 %v3237_v2, %s2966_s12  ;;  %s2972_s9 = smov 104   ;;  %s2973_s7 = smov 102   ;;  %vm314_vm0 = vcmp.lt.s32.totalorder %v3295_v9, 125  ;;  %vm365_vm1 = vcmp.lt.s32.totalorder %v3295_v9, 122  ;;  %vm297_vm2 = vcmp.lt.s32.totalorder %v3295_v9, 126  ;;  %vm280_vm3 = vcmp.lt.s32.totalorder %v3295_v9, 127 }
  0x52   : > { %s2974_s18 = smov 103   ;;  %s2975_s13 = smov 101   ;;  %vm331_vm4 = vcmp.lt.s32.totalorder %v3295_v9, 124  ;;  %vm416_vm5 = vcmp.lt.s32.totalorder %v3295_v9, 104  ;;  %vm348_vm6 = vcmp.lt.s32.totalorder %v3295_v9, 123  ;;  %vm382_vm7 = vcmp.lt.s32.totalorder %v3295_v9, 106 }
  0x53   : > { %s2976_s28 = smov 84   ;;  %s2977_s11 = smov 100   ;;  %vm467_vm8 = vcmp.lt.s32.totalorder %v3295_v9, 101  ;;  %vm399_vm9 = vcmp.lt.s32.totalorder %v3295_v9, 105  ;;  %vm5312_vm10 = vcmp.lt.s32.totalorder %v3295_v9, 103  ;;  %vm518_vm11 = vcmp.lt.s32.totalorder %v3295_v9, 83 }
  0x54   : > { %s2978_s15 = smov 83   ;;  %s2979_s30 = smov 37   ;;  %vm5305_vm12 = vcmp.lt.s32.totalorder %v3295_v9, 37  ;;  %vm450_vm13 = vcmp.lt.s32.totalorder %v3295_v9, 102  ;;  %vm5306_vm14 = vcmp.lt.s32.totalorder %v3295_v9, 100  ;;  %vm501_vm15 = vcmp.lt.s32.totalorder %v3295_v9, 84 }
  0x55   : > { %s2980_s0 = smov 120   ;;  %s2981_s24 = smov 119  }
  0x56   : > { %s2982_s4 = smov 39  }
  0x58   : > { %2359 = vrot.lane.b32.xlu2 %v3250_v5, %s2964_s6  ;;  %2349 = vrot.lane.b32.xlu1 %v3250_v5, %s2965_s3  ;;  %s2983_s6 = smov 38   ;;  %s2984_s3 = smov 121  }
  0x59   : > { %2339 = vrot.lane.b32.xlu0 %v3250_v5, %s2966_s12  ;;  %s2985_s12 = smov 12  }
  0x60   : > { %2374 = vrot.lane.b32.xlu2 %v3237_v2, %s2967_s26  ;;  %2369 = vrot.lane.b32.xlu1 %v3250_v5, %s2968_s2 }
  0x61   : > { %2364 = vrot.lane.b32.xlu0 %v3237_v2, %s2968_s2  ;;  %s2987_s2 = smov 40  }
  0x68   : > { %2389 = vrot.lane.b32.xlu2 %v3250_v5, %s2969_s22  ;;  %2384 = vrot.lane.b32.xlu1 %v3237_v2, %s2969_s22  ;;  %s2988_s22 = smov 58  }
  0x69   : > { %2379 = vrot.lane.b32.xlu0 %v3250_v5, %s2967_s26  ;;  %s2986_s26 = smov 56  }
  0x70   : > { %2404 = vrot.lane.b32.xlu2 %v3237_v2, %s2970_s8  ;;  %2399 = vrot.lane.b32.xlu1 %v3250_v5, %s2971_s27 }
  0x71   : > { %2394 = vrot.lane.b32.xlu0 %v3237_v2, %s2971_s27  ;;  %s2990_s27 = smov 57  }
  0x78   : > { %2419 = vrot.lane.b32.xlu2 %v3250_v5, %s2972_s9  ;;  %2414 = vrot.lane.b32.xlu1 %v3237_v2, %s2972_s9  ;;  %s2991_s9 = smov 15  }
  0x79   : > { %2409 = vrot.lane.b32.xlu0 %v3250_v5, %s2970_s8  ;;  %s2989_s8 = smov 13  }
  0x80   : > { %2434 = vrot.lane.b32.xlu2 %v3237_v2, %s2973_s7  ;;  %2429 = vrot.lane.b32.xlu1 %v3250_v5, %s2974_s18 }
  0x81   : > { %2424 = vrot.lane.b32.xlu0 %v3237_v2, %s2974_s18  ;;  %s2993_s18 = smov 14  }
  0x88   : > { %2449 = vrot.lane.b32.xlu2 %v3250_v5, %s2975_s13  ;;  %2444 = vrot.lane.b32.xlu1 %v3237_v2, %s2975_s13  ;;  %s5254_s13 = smov 16  }
  0x89   : > { %2439 = vrot.lane.b32.xlu0 %v3250_v5, %s2973_s7  ;;  %s2992_s7 = smov 59  }
  0x90   : > { %2464 = vrot.lane.b32.xlu2 %v3237_v2, %s2976_s28  ;;  %2459 = vrot.lane.b32.xlu1 %v3250_v5, %s2977_s11 }
  0x91   : > { %2454 = vrot.lane.b32.xlu0 %v3237_v2, %s2977_s11  ;;  %s5252_s11 = smov 118  }
  0x98   : > { %2479 = vrot.lane.b32.xlu2 %v3250_v5, %s2978_s15  ;;  %2474 = vrot.lane.b32.xlu1 %v3237_v2, %s2978_s15  ;;  %s5258_s15 = smov 62  }
  0x99   : > { %2469 = vrot.lane.b32.xlu0 %v3250_v5, %s2976_s28  ;;  %s5260_s28 = smov 60  }
  0xa0   : > { %2494 = vrot.lane.b32.xlu2 %v3237_v2, %s2979_s30  ;;  %2489 = vrot.lane.b32.xlu1 %v2488_v6, %s2980_s0 }
  0xa1   : > { %2484 = vrot.lane.b32.xlu0 %v2488_v6, %s2981_s24 }
  0xa8   : > { %2509 = vrot.lane.b32.xlu2 %v3237_v2, %s2982_s4  ;;  %2504 = vrot.lane.b32.xlu1 %v3237_v2, %s2983_s6 }
  0xa9   : > { %2499 = vrot.lane.b32.xlu0 %v2488_v6, %s2984_s3 }
  0xaa   : > { %v3289_v7 = vpop.permute.xlu2 %2354 }
  0xab   : > { %v5282_v10 = vunpack.i.h.bf16 %v3289_v7  ;;  %v5281_v11 = vunpack.i.l.bf16 %v3289_v7 }
  0xb0   : > { %2524 = vrot.lane.b32.xlu2 %v3237_v2, %s2985_s12  ;;  %2519 = vrot.lane.b32.xlu1 %v3237_v2, %s2986_s26 }
  0xb1   : > { %2514 = vrot.lane.b32.xlu0 %v3237_v2, %s2987_s2 }
  0xb2   : > { %v2360_v12 = vpop.permute.xlu2 %2359 }
  0xb3   : > { %v2362_v13 = vunpack.i.h.bf16 %v2360_v12  ;;  %v2361_v14 = vunpack.i.l.bf16 %v2360_v12 }
  0xb5   : > { %v3306_v15 = vsel %vm314_vm0, %v5282_v10, %v2361_v14  ;;  %v3312_v16 = vsel %vm314_vm0, %v2362_v13, %v5281_v11  ;;  %v3316_v17 = vsel %vm314_vm0, %v2361_v14, %v2362_v13 }
  0xb6   : > { %5443 = vst [vmem:[#allocation25_spill] sm:$0xff] %v3312_v16 }
  0xb7   : > { %5444 = vst [vmem:[#allocation26_spill] sm:$0xff] %v3316_v17 }
  0xb8   : > { %2539 = vrot.lane.b32.xlu2 %v3237_v2, %s2988_s22  ;;  %2534 = vrot.lane.b32.xlu1 %v3237_v2, %s2989_s8 }
  0xb9   : > { %2529 = vrot.lane.b32.xlu0 %v3237_v2, %s2990_s27 }
  0xba   : > { %v3324_v18 = vpop.permute.xlu2 %2374 }
  0xbb   : > { %v5287_v57 = vunpack.i.h.bf16 %v3324_v18  ;;  %v5285_v58 = vunpack.i.l.bf16 %v3324_v18 }
  0xc0   : > { %2554 = vrot.lane.b32.xlu2 %v3237_v2, %s2991_s9  ;;  %2549 = vrot.lane.b32.xlu1 %v3237_v2, %s2992_s7 }
  0xc1   : > { %2544 = vrot.lane.b32.xlu0 %v3237_v2, %s2993_s18 }
  0xc2   : > { %v3332_v19 = vpop.permute.xlu2 %2389  ;;  %v3334_v20 = vpop.permute.xlu1 %2344 }
  0xc3   : > { %v3336_v21 = vpop.permute.xlu0 %2334  ;;  %v2392_v22 = vunpack.i.h.bf16 %v3332_v19  ;;  %v2391_v23 = vunpack.i.l.bf16 %v3332_v19  ;;  %v5280_v27 = vunpack.i.h.bf16 %v3334_v20  ;;  %v5279_v28 = vunpack.i.l.bf16 %v3334_v20 }
  0xc4   : > { %v5278_v32 = vunpack.i.h.bf16 %v3336_v21  ;;  %v5277_v33 = vunpack.i.l.bf16 %v3336_v21 }
  0xc5   : > { %v3347_v24 = vsel %vm365_vm1, %v2391_v23, %v2392_v22 }
  0xc8   : > { %2569 = vrot.lane.b32.xlu2 %v3237_v2, %s5254_s13  ;;  %2564 = vrot.lane.b32.xlu1 %v3237_v2, %s5260_s28  ;;  %s5256_s13 = smov 61   ;;  %s5266_s28 = smov 18  }
  0xc9   : > { %2559 = vrot.lane.b32.xlu0 %v2488_v6, %s5252_s11  ;;  %s2998_s11 = smov 17  }
  0xca   : > { %v3354_v25 = vpop.permute.xlu2 %2404  ;;  %v2350_v26 = vpop.permute.xlu1 %2349 }
  0xcb   : > { %v2352_v29 = vunpack.i.h.bf16 %v2350_v26  ;;  %v2351_v30 = vunpack.i.l.bf16 %v2350_v26  ;;  %v2340_v31 = vpop.permute.xlu0 %2339 }
  0xcc   : > { %v2342_v34 = vunpack.i.h.bf16 %v2340_v31  ;;  %v2341_v35 = vunpack.i.l.bf16 %v2340_v31 }
  0xcd   : > { %v3366_v36 = vsel %vm297_vm2, %v5280_v27, %v2351_v30  ;;  %v3370_v37 = vsel %vm297_vm2, %v2351_v30, %v2352_v29  ;;  %v3376_v38 = vsel %vm297_vm2, %v2352_v29, %v5279_v28 }
  0xce   : > { %5445 = vst [vmem:[#allocation27_spill] sm:$0xff] %v3370_v37  ;;  %v3382_v39 = vsel %vm280_vm3, %v5278_v32, %v2341_v35  ;;  %v3386_v40 = vsel %vm280_vm3, %v2341_v35, %v2342_v34  ;;  %v3392_v41 = vsel %vm280_vm3, %v2342_v34, %v5277_v33 }
  0xcf   : > { %5446 = vst [vmem:[#allocation28_spill] sm:$0xff] %v3376_v38 }
  0xd0   : > { %5447 = vst [vmem:[#allocation29_spill] sm:$0xff] %v3386_v40  ;;  %2584 = vrot.lane.b32.xlu2 %v3237_v2, %s5258_s15  ;;  %2579 = vrot.lane.b32.xlu1 %v3237_v2, %s2998_s11  ;;  %s5264_s15 = smov 78  }
  0xd1   : > { %5448 = vst [vmem:[#allocation30_spill] sm:$0xff] %v3392_v41  ;;  %2574 = vrot.lane.b32.xlu0 %v3237_v2, %s5256_s13  ;;  %s5262_s13 = smov 34  }
  0xd2   : > { %v3400_v42 = vpop.permute.xlu2 %2419  ;;  %v2370_v43 = vpop.permute.xlu1 %2369 }
  0xd3   : > { %v2372_v44 = vunpack.i.h.bf16 %v2370_v43  ;;  %v2371_v45 = vunpack.i.l.bf16 %v2370_v43  ;;  %v3402_v46 = vpop.permute.xlu0 %2364  ;;  %v2422_v47 = vunpack.i.h.bf16 %v3400_v42  ;;  %v5275_v48 = vunpack.i.l.bf16 %v3400_v42 }
  0xd4   : > { %v5284_v49 = vunpack.i.h.bf16 %v3402_v46  ;;  %v5283_v50 = vunpack.i.l.bf16 %v3402_v46 }
  0xd5   : > { %v3412_v51 = vsel %vm331_vm4, %v2371_v45, %v2372_v44  ;;  %v3426_v53 = vsel %vm416_vm5, %v5275_v48, %v2422_v47 }
  0xd6   : > { %5449 = vst [vmem:[#allocation31_spill] sm:$0xff] %v3412_v51  ;;  %v3418_v52 = vsel %vm331_vm4, %v5284_v49, %v2371_v45  ;;  %v3432_v54 = vsel %vm331_vm4, %v2372_v44, %v5283_v50 }
  0xd7   : > { %5450 = vst [vmem:[#allocation32_spill] sm:$0xff] %v3432_v54 }
  0xd8   : > { %2599 = vrot.lane.b32.xlu2 %v3237_v2, %s5262_s13  ;;  %2594 = vrot.lane.b32.xlu1 %v3237_v2, %s5264_s15  ;;  %s5268_s13 = smov 80   ;;  %s5270_s15 = smov 35  }
  0xd9   : > { %2589 = vrot.lane.b32.xlu0 %v3237_v2, %s5266_s28  ;;  %s5272_s28 = smov 79  }
  0xda   : > { %v3440_v55 = vpop.permute.xlu2 %2434  ;;  %v3442_v56 = vpop.permute.xlu1 %2384 }
  0xdb   : > { %v5290_v59 = vunpack.i.h.bf16 %v3442_v56  ;;  %v5289_v60 = vunpack.i.l.bf16 %v3442_v56  ;;  %v2380_v61 = vpop.permute.xlu0 %2379  ;;  %v5458_v41 = vunpack.i.l.bf16 %v3440_v55 }
  0xdc   : > { %v2382_v62 = vunpack.i.h.bf16 %v2380_v61  ;;  %v2381_v63 = vunpack.i.l.bf16 %v2380_v61  ;;  %v5293_v61 = vunpack.i.h.bf16 %v3354_v25 }
  0xdd   : > { %v3454_v1 = vsel %vm365_vm1, %v5290_v59, %v2391_v23  ;;  %v3463_v6 = vsel %vm365_vm1, %v2392_v22, %v5289_v60 }
  0xde   : > { %5451 = vst [vmem:[#allocation33_spill] sm:$0xff] %v3463_v6  ;;  %v3469_v8 = vsel %vm348_vm6, %v5287_v57, %v2381_v63  ;;  %v3473_v12 = vsel %vm348_vm6, %v2381_v63, %v2382_v62  ;;  %v3479_v13 = vsel %vm348_vm6, %v2382_v62, %v5285_v58  ;;  %v5292_v62 = vunpack.i.l.bf16 %v3354_v25 }
  0xdf   : > { %5452 = vst [vmem:[#allocation34_spill] sm:$0xff] %v3479_v13 }
  0xe0   : > { %2614 = vrot.lane.b32.xlu2 %v3237_v2, %s5268_s13  ;;  %2609 = vrot.lane.b32.xlu1 %v3237_v2, %s5270_s15  ;;  %s3006_s13 = smov 82   ;;  %s3007_s15 = smov 81  }
  0xe1   : > { %2604 = vrot.lane.b32.xlu0 %v3237_v2, %s5272_s28  ;;  %s3008_s28 = smov 36  }
  0xe2   : > { %v3487_v14 = vpop.permute.xlu2 %2449  ;;  %v3489_v19 = vpop.permute.xlu1 %2399 }
  0xe3   : > { %v2402_v22 = vunpack.i.h.bf16 %v3489_v19  ;;  %v5274_v23 = vunpack.i.l.bf16 %v3489_v19  ;;  %v3493_v26 = vpop.permute.xlu0 %2394  ;;  %v2452_v29 = vunpack.i.h.bf16 %v3487_v14  ;;  %v5276_v30 = vunpack.i.l.bf16 %v3487_v14 }
  0xe4   : > { %v5291_v31 = vunpack.i.l.bf16 %v3493_v26  ;;  %v5480_v17 = vunpack.i.h.bf16 %v3493_v26 }
  0xe5   : > { %v3504_v34 = vsel %vm382_vm7, %v5274_v23, %v2402_v22  ;;  %v3510_v35 = vsel %vm467_vm8, %v5276_v30, %v2452_v29  ;;  %v2643_v30 = vpack.i.bf16 %v3233_v0, %v3246_v4 }
  0xe6   : > { %v3516_v43 = vsel %vm382_vm7, %v2402_v22, %v5291_v31 }
  0xe7   : > { %5453 = vst [vmem:[#allocation35_spill] sm:$0xff] %v3516_v43 }
  0xe8   : > { %2629 = vrot.lane.b32.xlu2 %v3237_v2, %s3006_s13  ;;  %2624 = vrot.lane.b32.xlu1 %v3237_v2, %s3007_s15 }
  0xe9   : > { %2619 = vrot.lane.b32.xlu0 %v3237_v2, %s3008_s28 }
  0xea   : > { %v3524_v44 = vpop.permute.xlu2 %2464  ;;  %v3526_v45 = vpop.permute.xlu1 %2414 }
  0xeb   : > { %v5294_v63 = vunpack.i.l.bf16 %v3526_v45  ;;  %v2410_v22 = vpop.permute.xlu0 %2409  ;;  %v5477_v37 = vunpack.i.l.bf16 %v3526_v45 }
  0xec   : > { %v2412_v23 = vunpack.i.h.bf16 %v2410_v22  ;;  %v2411_v48 = vunpack.i.l.bf16 %v2410_v22 }
  0xed   : > { %v3540_v2 = vsel %vm416_vm5, %v2422_v47, %v5294_v63 }
  0xee   : > { %5454 = vst [vmem:[#allocation36_spill] sm:$0xff] %v3540_v2  ;;  %v3546_v33 = vsel %vm399_vm9, %v5293_v61, %v2411_v48  ;;  %v3550_v22 = vsel %vm399_vm9, %v2411_v48, %v2412_v23  ;;  %v3556_v32 = vsel %vm399_vm9, %v2412_v23, %v5292_v62 }
  0xef   : > { %5455 = vst [vmem:[#allocation37_spill] sm:$0xff] %v3556_v32  ;;  %v2466_v32 = vunpack.i.l.bf16 %v3524_v44 }
  0xf0   : > { %2644 = vrot.lane.b32.xlu2 %v2643_v30, %s2984_s3  ;;  %2639 = vrot.lane.b32.xlu1 %v2643_v30, %s2980_s0  ;;  %s5475_s0 = smov 16   ;;  %s5505_s3 = smov 78  }
  0xf1   : > { %2634 = vrot.lane.b32.xlu0 %v2643_v30, %s2981_s24  ;;  %s5486_s24 = smov 62  }
  0xf2   : > { %v3561_v47 = vpop.permute.xlu2 %2479  ;;  %v3563_v28 = vpop.permute.xlu1 %2429 }
  0xf3   : > { %v2482_v48 = vunpack.i.h.bf16 %v3561_v47  ;;  %v5286_v27 = vunpack.i.l.bf16 %v3561_v47  ;;  %v2432_v11 = vunpack.i.h.bf16 %v3563_v28  ;;  %v5288_v23 = vunpack.i.l.bf16 %v3563_v28  ;;  %v3570_v10 = vpop.permute.xlu0 %2424 }
  0xf4   : > { %v5295_v50 = vunpack.i.l.bf16 %v3570_v10 }
  0xf5   : > { %v3578_v30 = vsel %vm518_vm11, %v5286_v27, %v2482_v48  ;;  %v3584_v49 = vsel %vm5312_vm10, %v5288_v23, %v2432_v11 }
  0xf6   : > { %v3590_v58 = vsel %vm5312_vm10, %v2432_v11, %v5295_v50 }
  0xf7   : > { %5456 = vst [vmem:[#allocation38_spill] sm:$0xff] %v3590_v58 }
  0xf8   : > { %2659 = vrot.lane.b32.xlu2 %v3250_v5, %s2982_s4  ;;  %2654 = vrot.lane.b32.xlu1 %v3250_v5, %s2983_s6  ;;  %s5487_s4 = smov 18   ;;  %s5488_s6 = smov 61  }
  0xf9   : > { %2649 = vrot.lane.b32.xlu0 %v3250_v5, %s2979_s30  ;;  %s5472_s30 = smov 60  }
  0xfa   : > { %v3598_v27 = vpop.permute.xlu2 %2494  ;;  %v3600_v57 = vpop.permute.xlu1 %2444 }
  0xfb   : > { %v5297_v11 = vunpack.i.h.bf16 %v3598_v27  ;;  %v5296_v60 = vunpack.i.l.bf16 %v3598_v27  ;;  %v2446_v59 = vunpack.i.l.bf16 %v3600_v57  ;;  %v3607_v31 = vpop.permute.xlu0 %2439 }
  0xfc   : > { %v2442_v62 = vunpack.i.h.bf16 %v3607_v31  ;;  %v5298_v61 = vunpack.i.l.bf16 %v3607_v31 }
  0xfd   : > { %v793_v63 = vsel %vm5305_vm12, %v5296_v60, %v5297_v11  ;;  %v3626_v23 = vsel %vm467_vm8, %v2452_v29, %v2446_v59  ;;  %vm5310_vm12 = vcmp.lt.s32.totalorder %v3295_v9, 119 }
  0xfe   : > { %1303 = vmatpush.msra.mxu1 %v793_v63  ;;  %v3622_v50 = vsel %vm450_vm13, %v5298_v61, %v2442_v62  ;;  %5457 = vst [vmem:[#allocation39_spill] sm:$0xff] %v3626_v23  ;;  %v3632_v38 = vsel %vm450_vm13, %v2442_v62, %v5458_v41 }
  0xff   : > { %5459 = vst [vmem:[#allocation40_spill] sm:$0xff] %v3632_v38 }
 0x100   : > { %2674 = vrot.lane.b32.xlu2 %v3250_v5, %s2986_s26  ;;  %2669 = vrot.lane.b32.xlu1 %v3250_v5, %s2985_s12  ;;  %s5506_s12 = smov 118   ;;  %s5509_s26 = smov 34  }
 0x101   : > { %2664 = vrot.lane.b32.xlu0 %v3250_v5, %s2987_s2  ;;  %s5514_s2 = smov 79  }
 0x102   : > { %v3640_v63 = vpop.permute.xlu2 %2509  ;;  %v3642_v60 = vpop.permute.xlu1 %2459 }
 0x103   : > { %v2462_v29 = vunpack.i.h.bf16 %v3642_v60  ;;  %v5301_v11 = vunpack.i.l.bf16 %v3642_v60  ;;  %v3646_v61 = vpop.permute.xlu0 %2454  ;;  %v5485_v51 = vunpack.i.l.bf16 %v3640_v63 }
 0x104   : > { %v2456_v41 = vunpack.i.l.bf16 %v3646_v61  ;;  %v5307_v23 = vunpack.i.h.bf16 %v3646_v61 }
 0x105   : > { %v3654_v62 = vsel %vm5306_vm14, %v5301_v11, %v2462_v29 }
 0x106   : > { %v3658_v16 = vsel %vm5306_vm14, %v2462_v29, %v2456_v41 }
 0x107   : > { %5460 = vst [vmem:[#allocation41_spill] sm:$0xff] %v3658_v16 }
 0x108   : > { %2689 = vrot.lane.b32.xlu2 %v3250_v5, %s2993_s18  ;;  %2684 = vrot.lane.b32.xlu1 %v3250_v5, %s2990_s27  ;;  %s5734_s18 = sld [smem:[#allocation17_spill]] }
 0x109   : > { %2679 = vrot.lane.b32.xlu0 %v3250_v5, %s2989_s8  ;;  %s5521_s8 = smov 80  }
 0x10a   : > { %v3666_v54 = vpop.permute.xlu2 %2524  ;;  %v3668_v13 = vpop.permute.xlu1 %2474 }
 0x10b   : > { %5461 = vst [vmem:[#allocation42_spill] sm:$0xff] %v3666_v54  ;;  %v5303_v6 = vunpack.i.h.bf16 %v3668_v13  ;;  %v2476_v29 = vunpack.i.l.bf16 %v3668_v13  ;;  %v3673_v43 = vpop.permute.xlu0 %2469 }
 0x10c   : > { %v2472_v2 = vunpack.i.h.bf16 %v3673_v43  ;;  %v5304_v58 = vunpack.i.l.bf16 %v3673_v43 }
 0x10d   : > { %v521_v38 = vsel %vm518_vm11, %v2476_v29, %v5303_v6  ;;  %v3685_v11 = vsel %vm518_vm11, %v2482_v48, %v2476_v29  ;;  %v487_v6 = vsel %vm5306_vm14, %v2456_v41, %v5307_v23  ;;  %vm5311_vm14 = vcmp.lt.s32.totalorder %v3295_v9, 120 }
 0x10e   : > { %5462 = vst [vmem:[#allocation43_spill] sm:$0xff] %v3685_v11  ;;  %1274 = vmatpush.msra.mxu0 %v521_v38  ;;  %v3692_v16 = vsel %vm501_vm15, %v5304_v58, %v2472_v2  ;;  %v3696_v40 = vsel %vm501_vm15, %v2472_v2, %v2466_v32  ;;  %v5464_v38 = vunpack.i.h.bf16 %v3524_v44  ;;  %v5467_v2 = vunpack.i.h.bf16 %v3600_v57 }
 0x10f   : > { %5463 = vst [vmem:[#allocation44_spill] sm:$0xff] %v3696_v40  ;;  %v5313_v23 = vunpack.i.h.bf16 %v3526_v45  ;;  %v5468_v40 = vunpack.i.h.bf16 %v3440_v55 }
 0x110   : > { %667 = vrot.lane.b32.xlu2 %v3243_v3, %s2992_s7  ;;  %2699 = vrot.lane.b32.xlu1 %v3250_v5, %s2991_s9  ;;  %v504_v48 = vsel %vm501_vm15, %v2466_v32, %v5464_v38  ;;  %v470_v41 = vsel %vm467_vm8, %v2446_v59, %v5467_v2 }
 0x111   : > { %1275 = vmatpush.msra.mxu0 %v504_v48  ;;  %2694 = vrot.lane.b32.xlu0 %v3250_v5, %s2988_s22  ;;  %s5515_s22 = smov 35  }
 0x112   : > { %v3710_v29 = vpop.permute.xlu2 %2539  ;;  %v3712_v58 = vpop.permute.xlu1 %2489 }
 0x113   : > { %5465 = vst [vmem:[#allocation45_spill] sm:$0xff] %v3712_v58  ;;  %v3721_v38 = vpop.permute.xlu0 %2484  ;;  %1276 = vmatpush.msra.mxu0 %v487_v6  ;;  %v5469_v6 = vunpack.i.l.bf16 %v3440_v55  ;;  %v5470_v59 = vunpack.i.h.bf16 %v3712_v58  ;;  %v5471_v2 = vunpack.i.l.bf16 %v3712_v58 }
 0x114   : > { %5466 = vst [vmem:[#allocation46_spill] sm:$0xff] %v3721_v38  ;;  %v5309_v5 = vunpack.i.h.bf16 %v3721_v38  ;;  %v5308_v48 = vunpack.i.l.bf16 %v3721_v38 }
 0x115   : > { %1277 = vmatpush.msra.mxu0 %v470_v41  ;;  %v453_v32 = vsel %vm450_vm13, %v5469_v6, %v5468_v40  ;;  %v1008_v41 = vsel %vm5311_vm14, %v5471_v2, %v5470_v59  ;;  %v5473_v40 = vunpack.i.h.bf16 %v3570_v10  ;;  %v5474_v6 = vunpack.i.l.bf16 %v3570_v10 }
 0x116   : > { %v1025_v11 = vsel %vm5310_vm12, %v5308_v48, %v5309_v5  ;;  %vm773_vm12 = vcmp.lt.s32.totalorder %v3295_v9, 38  ;;  %vm989_vm14 = vcmp.lt.s32.totalorder %v3295_v9, 121 }
 0x117   : > { %1278 = vmatpush.msra.mxu0 %v453_v32  ;;  %1332 = vmatpush.msra.mxu2 %v1025_v11  ;;  %v436_v11 = vsel %vm5312_vm10, %v5474_v6, %v5473_v40  ;;  %v419_v40 = vsel %vm416_vm5, %v5477_v37, %v5313_v23  ;;  %vm756_vm10 = vcmp.lt.s32.totalorder %v3295_v9, 39  ;;  %v5478_v32 = vunpack.i.h.bf16 %v3354_v25 }
 0x118   : > { %871 = vrot.lane.b32.xlu2 %v3243_v3, %s2998_s11  ;;  %650 = vrot.lane.b32.xlu1 %v3243_v3, %s5472_s30  ;;  %v5479_v37 = vunpack.i.l.bf16 %v3354_v25 }
 0x119   : > { %888 = vrot.lane.b32.xlu0 %v3243_v3, %s5475_s0  ;;  %1279 = vmatpush.msra.mxu0 %v436_v11 }
 0x11a   : > { %1333 = vmatpush.msra.mxu2 %v1008_v41  ;;  %v3765_v48 = vpop.permute.xlu2 %2554  ;;  %v3767_v5 = vpop.permute.xlu1 %2504  ;;  %v402_v23 = vsel %vm399_vm9, %v5479_v37, %v5478_v32  ;;  %v5481_v41 = vunpack.i.l.bf16 %v3493_v26  ;;  %v5484_v37 = vunpack.i.h.bf16 %v3640_v63  ;;  %vm960_vm9 = vcmp.lt.s32.totalorder %v3295_v9, 12 }
 0x11b   : > { %5476 = vst [vmem:[#allocation47_spill] sm:$0xff] %v3765_v48  ;;  %v5316_v6 = vunpack.i.h.bf16 %v3767_v5  ;;  %v5315_v11 = vunpack.i.l.bf16 %v3767_v5  ;;  %v3778_v59 = vpop.permute.xlu0 %2499  ;;  %1280 = vmatpush.msra.mxu0 %v419_v40 }
 0x11c   : > { %v385_v2 = vsel %vm382_vm7, %v5481_v41, %v5480_v17  ;;  %v5482_v25 = vunpack.i.h.bf16 %v3778_v59  ;;  %v5483_v32 = vunpack.i.l.bf16 %v3778_v59  ;;  %v5497_v17 = vunpack.i.l.bf16 %v3402_v46 }
 0x11d   : > { %1281 = vmatpush.msra.mxu0 %v402_v23  ;;  %v776_v40 = vsel %vm773_vm12, %v5315_v11, %v5316_v6  ;;  %v759_v11 = vsel %vm756_vm10, %v5485_v51, %v5484_v37  ;;  %v5490_v51 = vunpack.i.l.bf16 %v3442_v56 }
 0x11e   : > { %1304 = vmatpush.msra.mxu1 %v776_v40  ;;  %v991_v23 = vsel %vm989_vm14, %v5483_v32, %v5482_v25  ;;  %v5489_v40 = vunpack.i.h.bf16 %v3442_v56  ;;  %v5494_v56 = vunpack.i.l.bf16 %v3324_v18 }
 0x11f   : > { %1282 = vmatpush.msra.mxu0 %v385_v2  ;;  %1334 = vmatpush.msra.mxu2 %v991_v23  ;;  %v5493_v23 = vunpack.i.h.bf16 %v3324_v18  ;;  %v5496_v18 = vunpack.i.h.bf16 %v3402_v46 }
 0x120   : > { %616 = vrot.lane.b32.xlu2 %v3243_v3, %s5486_s24  ;;  %854 = vrot.lane.b32.xlu1 %v3243_v3, %s5487_s4  ;;  %v3828_v2 = vsel %vm365_vm1, %v5490_v51, %v5489_v40  ;;  %vm739_vm1 = vcmp.lt.s32.totalorder %v3295_v9, 40  ;;  %v5500_v51 = vunpack.i.l.bf16 %v3666_v54 }
 0x121   : > { %1305 = vmatpush.msra.mxu1 %v759_v11  ;;  %633 = vrot.lane.b32.xlu0 %v3243_v3, %s5488_s6  ;;  %5491 = vst [vmem:[#allocation48_spill] sm:$0xff] %v3828_v2  ;;  %v3845_v37 = vsel %vm348_vm6, %v5494_v56, %v5493_v23  ;;  %v3860_v23 = vsel %vm331_vm4, %v5497_v17, %v5496_v18  ;;  %v5499_v56 = vunpack.i.h.bf16 %v3666_v54  ;;  %vm722_vm6 = vcmp.lt.s32.totalorder %v3295_v9, 56 }
 0x122   : > { %1283 = vmatpush.msra.mxu0 %v3828_v2  ;;  %1335 = vmatpush.msra.mxu2 %v3454_v1  ;;  %v3832_v25 = vpop.permute.xlu2 %2569  ;;  %v3834_v32 = vpop.permute.xlu1 %2519  ;;  %5495 = vst [vmem:[#allocation50_spill] sm:$0xff] %v3845_v37  ;;  %v5501_v17 = vunpack.i.h.bf16 %v3289_v7  ;;  %v5502_v18 = vunpack.i.l.bf16 %v3289_v7  ;;  %v5507_v7 = vunpack.i.h.bf16 %v3334_v20  ;;  %vm5321_vm4 = vcmp.lt.s32.totalorder %v3295_v9, 13 }
 0x123   : > { %5492 = vst [vmem:[#allocation49_spill] sm:$0xff] %v3832_v25  ;;  %v3837_v11 = vpop.permute.xlu0 %2514  ;;  %v963_v40 = vsel %vm960_vm9, %v5500_v51, %v5499_v56  ;;  %v5503_v56 = vunpack.i.h.bf16 %v3834_v32 }
 0x124   : > { %v5320_v6 = vunpack.i.h.bf16 %v3837_v11  ;;  %v5319_v41 = vunpack.i.l.bf16 %v3837_v11  ;;  %1284 = vmatpush.msra.mxu0 %v3845_v37  ;;  %1336 = vmatpush.msra.mxu2 %v3469_v8  ;;  %5498 = vst [vmem:[#allocation51_spill] sm:$0xff] %v3860_v23  ;;  %v317_v51 = vsel %vm314_vm0, %v5502_v18, %v5501_v17  ;;  %v5508_v17 = vunpack.i.l.bf16 %v3334_v20 }
 0x125   : > { %v5512_v18 = vunpack.i.h.bf16 %v3336_v21  ;;  %vm5329_vm0 = vcmp.lt.s32.totalorder %v3295_v9, 57  ;;  %v5325_v20 = vunpack.i.h.bf16 %v3710_v29 }
 0x126   : > { %1285 = vmatpush.msra.mxu0 %v3860_v23  ;;  %1337 = vmatpush.msra.mxu2 %v3418_v52  ;;  %v742_v46 = vsel %vm739_vm1, %v5319_v41, %v5320_v6  ;;  %v5504_v23 = vunpack.i.l.bf16 %v3834_v32 }
 0x127   : > { %1306 = vmatpush.msra.mxu1 %v742_v46 }
 0x128   : > { %1286 = vmatpush.msra.mxu0 %v317_v51  ;;  %1338 = vmatpush.msra.mxu2 %v963_v40  ;;  %v725_v37 = vsel %vm722_vm6, %v5504_v23, %v5503_v56  ;;  %v300_v40 = vsel %vm297_vm2, %v5508_v17, %v5507_v7  ;;  %v5513_v51 = vunpack.i.l.bf16 %v3336_v21  ;;  %v5323_v7 = vunpack.i.l.bf16 %v3710_v29 }
 0x129   : > { %599 = vrot.lane.b32.xlu2 %v3243_v3, %s5505_s3  ;;  %1038 = vrot.lane.b32.xlu1 %v3246_v4, %s5506_s12  ;;  %vm5326_vm2 = vcmp.lt.s32.totalorder %v3295_v9, 58 }
 0x12a   : > { %837 = vrot.lane.b32.xlu0 %v3243_v3, %s5509_s26  ;;  %1287 = vmatpush.msra.mxu0 %v300_v40  ;;  %v3901_v46 = vpop.permute.xlu2 %2584  ;;  %v3903_v23 = vpop.permute.xlu1 %2534  ;;  %v283_v56 = vsel %vm280_vm3, %v5513_v51, %v5512_v18  ;;  %v691_v51 = vsel %vm5326_vm2, %v5323_v7, %v5325_v20  ;;  %vm5333_vm3 = vcmp.lt.s32.totalorder %v3295_v9, 59  ;;  %vm5336_vm2 = vcmp.lt.s32.totalorder %v3295_v9, 15 }
 0x12b   : > { %5510 = vst [vmem:[#allocation52_spill] sm:$0xff] %v3901_v46  ;;  %1307 = vmatpush.msra.mxu1 %v725_v37  ;;  %v5327_v17 = vunpack.i.h.bf16 %v3903_v23  ;;  %v5322_v40 = vunpack.i.l.bf16 %v3903_v23  ;;  %v3917_v41 = vpop.permute.xlu0 %2529 }
 0x12c   : > { %5511 = vst [vmem:[#allocation53_spill] sm:$0xff] %v3903_v23  ;;  %v5328_v21 = vunpack.i.h.bf16 %v3917_v41  ;;  %v5324_v6 = vunpack.i.l.bf16 %v3917_v41  ;;  %1288 = vmatpush.msra.mxu0 %v283_v56 }
 0x12d   : > { %v946_v37 = vsel %vm5321_vm4, %v5322_v40, %v5327_v17  ;;  %vm926_vm4 = vcmp.lt.s32.totalorder %v3295_v9, 14  ;;  %v5518_v17 = vunpack.i.l.bf16 %v3765_v48 }
 0x12e   : > { %v708_v18 = vsel %vm5329_vm0, %v5324_v6, %v5328_v21  ;;  %1339 = vmatpush.msra.mxu2 %v946_v37  ;;  %1289 = vmatpush.msra.mxu0 %v3233_v0  ;;  %vm5343_vm0 = vcmp.lt.s32.totalorder %v3295_v9, 16  ;;  %v5517_v21 = vunpack.i.h.bf16 %v3765_v48 }
 0x12f   : > { %1308 = vmatpush.msra.mxu1 %v708_v18 }
 0x130   : > { %v912_v2 = vsel %vm5336_vm2, %v5518_v17, %v5517_v21  ;;  %vm5344_vm2 = vcmp.lt.s32.totalorder %v3295_v9, 118 }
 0x131   : > { %803 = vrot.lane.b32.xlu2 %v3243_v3, %s3008_s28  ;;  %582 = vrot.lane.b32.xlu1 %v3243_v3, %s5514_s2 }
 0x132   : > { %820 = vrot.lane.b32.xlu0 %v3243_v3, %s5515_s22  ;;  %1309 = vmatpush.msra.mxu1 %v691_v51  ;;  %v3947_v56 = vpop.permute.xlu2 %2599  ;;  %v3949_v0 = vpop.permute.xlu1 %2549 }
 0x133   : > { %5516 = vst [vmem:[#allocation54_spill] sm:$0xff] %v3949_v0  ;;  %v5332_v40 = vunpack.i.h.bf16 %v3949_v0  ;;  %v5331_v7 = vunpack.i.l.bf16 %v3949_v0  ;;  %v3957_v6 = vpop.permute.xlu0 %2544 }
 0x134   : > { %v5335_v51 = vunpack.i.h.bf16 %v3957_v6  ;;  %v5334_v20 = vunpack.i.l.bf16 %v3957_v6 }
 0x135   : > { %v674_v18 = vsel %vm5333_vm3, %v5331_v7, %v5332_v40  ;;  %v5520_v7 = vunpack.i.l.bf16 %v3832_v25  ;;  %vm5345_vm3 = vcmp.lt.s32.totalorder %v3295_v9, 60 }
 0x136   : > { %1310 = vmatpush.msra.mxu1 %v674_v18  ;;  %v929_v37 = vsel %vm926_vm4, %v5334_v20, %v5335_v51  ;;  %v5519_v18 = vunpack.i.h.bf16 %v3832_v25  ;;  %v5523_v25 = vunpack.i.l.bf16 %v3561_v47 }
 0x137   : > { %1340 = vmatpush.msra.mxu2 %v929_v37 }
 0x138   : > { %v895_v37 = vsel %vm5343_vm0, %v5520_v7, %v5519_v18  ;;  %vm1261_vm0 = vcmask 64512  }
 0x139   : > { %531 = vrot.lane.b32.xlu2 %v3243_v3, %s3006_s13  ;;  %548 = vrot.lane.b32.xlu1 %v3243_v3, %s3007_s15 }
 0x13a   : > { %565 = vrot.lane.b32.xlu0 %v3243_v3, %s5521_s8  ;;  %1341 = vmatpush.msra.mxu2 %v912_v2  ;;  %v3995_v40 = vpop.permute.xlu2 %2614  ;;  %v3997_v17 = vpop.permute.xlu1 %2564 }
 0x13b   : > { %5522 = vst [vmem:[#allocation55_spill] sm:$0xff] %v3997_v17  ;;  %v5379_v21 = vunpack.i.h.bf16 %v3997_v17  ;;  %v5346_v20 = vunpack.i.l.bf16 %v3997_v17  ;;  %v4002_v51 = vpop.permute.xlu0 %2559  ;;  %v4026_v17 = vld [vmem:[%s3222_s21 + $0x18] sm:$0xff] }
 0x13c   : > { %v5351_v7 = vunpack.i.h.bf16 %v4002_v51  ;;  %v5347_v3 = vunpack.i.l.bf16 %v4002_v51  ;;  %1342 = vmatpush.msra.mxu2 %v895_v37  ;;  %v5524_v37 = vunpack.i.h.bf16 %v3668_v13 }
 0x13d   : > { %v657_v2 = vsel %vm5345_vm3, %v5346_v20, %v5379_v21  ;;  %vm875_vm3 = vcmp.lt.s32.totalorder %v3295_v9, 17 }
 0x13e   : > { %1311 = vmatpush.msra.mxu1 %v657_v2  ;;  %v1042_v18 = vsel %vm5344_vm2, %v5347_v3, %v5351_v7  ;;  %v520_v0 = vsel %vm518_vm11, %v5524_v37, %v5523_v25  ;;  %v5525_v2 = vunpack.i.l.bf16 %v3673_v43  ;;  %v5529_v37 = vunpack.i.h.bf16 %v3646_v61 }
 0x13f   : > { %1376 = vmatpush.msra.mxu3 %v1042_v18  ;;  %v5526_v18 = vunpack.i.h.bf16 %v3524_v44  ;;  %vm5530_vm11 = vcmp.lt.s32.totalorder %v3295_v9, 100  ;;  %vm637_vm2 = vcmp.lt.s32.totalorder %v3295_v9, 61  ;;  %v5367_v44 = vunpack.i.h.bf16 %v3901_v46 }
 0x140   : > { %2099 = vmatmul.msk.f32.vlgmr.msra.gmra.mxu3 %vm1261_vm0, %v4026_v17  ;;  %v5544_v7 = vunpack.i.l.bf16 %v3778_v59 }
 0x141   : > { %1390 = vmatpush.msrb.mxu3 %v520_v0  ;;  %652 = vrot.lane.b32.xlu2 %v3246_v4, %s5472_s30  ;;  %v503_v13 = vsel %vm501_vm15, %v5526_v18, %v5525_v2  ;;  %v5528_v0 = vunpack.i.l.bf16 %v3642_v60  ;;  %vm620_vm15 = vcmp.lt.s32.totalorder %v3295_v9, 62 }
 0x142   : > { %890 = vrot.lane.b32.xlu1 %v3246_v4, %s5475_s0  ;;  %669 = vrot.lane.b32.xlu0 %v3246_v4, %s2992_s7  ;;  %v4040_v47 = vpop.permute.xlu2 %2629  ;;  %v4042_v25 = vpop.permute.xlu1 %2579  ;;  %v5349_v4 = vunpack.i.l.bf16 %v3901_v46  ;;  %s5733_s7 = sld [smem:[#allocation16_spill]] }
 0x143   : > { %1391 = vmatpush.msrb.mxu3 %v503_v13  ;;  %5527 = vst [vmem:[#allocation56_spill] sm:$0xff] %v4042_v25  ;;  %v486_v43 = vsel %vm5530_vm11, %v5529_v37, %v5528_v0  ;;  %v5370_v2 = vunpack.i.h.bf16 %v4042_v25  ;;  %v5348_v18 = vunpack.i.l.bf16 %v4042_v25  ;;  %v4056_v13 = vpop.permute.xlu0 %2574  ;;  %v5532_v0 = vunpack.i.l.bf16 %v3487_v14 }
 0x144   : > { %5531 = vst [vmem:[#allocation57_spill] sm:$0xff] %v4056_v13  ;;  %v5368_v60 = vunpack.i.h.bf16 %v4056_v13  ;;  %v5350_v61 = vunpack.i.l.bf16 %v4056_v13  ;;  %v5533_v37 = vunpack.i.h.bf16 %v3600_v57  ;;  %v5534_v57 = vunpack.i.l.bf16 %v3607_v31 }
 0x145   : > { %1392 = vmatpush.msrb.mxu3 %v486_v43  ;;  %v878_v3 = vsel %vm875_vm3, %v5348_v18, %v5370_v2  ;;  %v5535_v43 = vunpack.i.h.bf16 %v3440_v55  ;;  %v4101_v55 = vld [vmem:[%s3222_s21 + $0x38] sm:$0xff]  ;;  %v5536_v31 = vunpack.i.l.bf16 %v3563_v28  ;;  %v5541_v18 = vunpack.i.h.bf16 %v3526_v45 }
 0x146   : > { %v469_v20 = vsel %vm467_vm8, %v5533_v37, %v5532_v0  ;;  %v640_v14 = vsel %vm637_vm2, %v5350_v61, %v5368_v60  ;;  %1343 = vmatpush.msra.mxu2 %v878_v3  ;;  %v4094_v37 = vld [vmem:[%s3214_s5 + $0x18] sm:$0xff]  ;;  %v5537_v3 = vunpack.i.h.bf16 %v3570_v10  ;;  %vm5538_vm8 = vcmp.lt.s32.totalorder %v3295_v9, 103 }
 0x147   : > { %1393 = vmatpush.msrb.mxu3 %v469_v20  ;;  %1312 = vmatpush.msra.mxu1 %v640_v14  ;;  %v452_v0 = vsel %vm450_vm13, %v5535_v43, %v5534_v57  ;;  %v623_v20 = vsel %vm620_vm15, %v5349_v4, %v5367_v44  ;;  %vm603_vm13 = vcmp.lt.s32.totalorder %v3295_v9, 78  ;;  %vm858_vm11 = vcmp.lt.s32.totalorder %v3295_v9, 18 }
 0x148   : > { %v435_v14 = vsel %vm5538_vm8, %v5537_v3, %v5536_v31  ;;  %v5354_v45 = vunpack.i.l.bf16 %v3947_v56  ;;  %2100 = vmatmul.msk.f32.gmra.mxu3 %vm1261_vm0, %v4101_v55  ;;  %vm5360_vm8 = vcmp.lt.s32.totalorder %v3295_v9, 80  ;;  %v5549_v2 = vunpack.i.l.bf16 %v3834_v32 }
 0x149   : > { %1394 = vmatpush.msrb.mxu3 %v452_v0  ;;  %856 = vrot.lane.b32.xlu2 %v4094_v37, %s5487_s4  ;;  %v5540_v0 = vunpack.i.l.bf16 %v3400_v42  ;;  %v5356_v42 = vunpack.i.h.bf16 %v3947_v56 }
 0x14a   : > { %635 = vrot.lane.b32.xlu1 %v4094_v37, %s5488_s6  ;;  %873 = vrot.lane.b32.xlu0 %v4094_v37, %s2998_s11  ;;  %v2645_v57 = vpop.permute.xlu2 %2644  ;;  %v4111_v43 = vpop.permute.xlu1 %2594 }
 0x14b   : > { %1313 = vmatpush.msra.mxu1 %v623_v20  ;;  %5539 = vst [vmem:[#allocation58_spill] sm:$0xff] %v4111_v43  ;;  %v418_v4 = vsel %vm416_vm5, %v5541_v18, %v5540_v0  ;;  %1395 = vmatpush.msrb.mxu3 %v435_v14  ;;  %v2647_v28 = vunpack.i.h.bf16 %v2645_v57  ;;  %v2646_v10 = vunpack.i.l.bf16 %v2645_v57  ;;  %v5353_v20 = vunpack.i.h.bf16 %v4111_v43  ;;  %v4123_v3 = vpop.permute.xlu0 %2589 }
 0x14c   : > { %v5352_v31 = vunpack.i.l.bf16 %v4111_v43  ;;  %5542 = vst [vmem:[#allocation59_spill] sm:$0xff] %v4123_v3  ;;  %v5369_v61 = vunpack.i.h.bf16 %v4123_v3  ;;  %v5355_v18 = vunpack.i.l.bf16 %v4123_v3  ;;  %vm841_vm5 = vcmp.lt.s32.totalorder %v3295_v9, 34 }
 0x14d   : > { %1396 = vmatpush.msrb.mxu3 %v418_v4  ;;  %v5543_v57 = vunpack.i.h.bf16 %v3778_v59  ;;  %v4148_v4 = vsel %vm989_vm14, %v2647_v28, %v5544_v7  ;;  %v5546_v59 = vunpack.i.l.bf16 %v3489_v19  ;;  %v5547_v7 = vunpack.i.h.bf16 %v3493_v26 }
 0x14e   : > { %v606_v14 = vsel %vm603_vm13, %v5352_v31, %v5353_v20  ;;  %5545 = vst [vmem:[#allocation60_spill] sm:$0xff] %v4148_v4  ;;  %v861_v31 = vsel %vm858_vm11, %v5355_v18, %v5369_v61  ;;  %v4158_v20 = vsel %vm989_vm14, %v2646_v10, %v2647_v28  ;;  %v2712_v28 = vld [vmem:[%s3214_s5] sm:$0xff]  ;;  %v5560_v4 = vunpack.i.h.bf16 %v3712_v58 }
 0x14f   : > { %v4142_v0 = vsel %vm989_vm14, %v5543_v57, %v2646_v10  ;;  %1314 = vmatpush.msra.mxu1 %v606_v14  ;;  %1397 = vmatpush.msrb.mxu3 %v3546_v33  ;;  %v384_v14 = vsel %vm382_vm7, %v5547_v7, %v5546_v59  ;;  %v844_v57 = vsel %vm841_vm5, %v5354_v45, %v5356_v42  ;;  %v4176_v33 = vld [vmem:[%s3222_s21 + $0x58] sm:$0xff]  ;;  %vm5362_vm7 = vcmp.lt.s32.totalorder %v3295_v9, 79 }
 0x150   : > { %1344 = vmatpush.msra.mxu2 %v861_v31  ;;  %vm5361_vm14 = vcmp.lt.s32.totalorder %v3295_v9, 35  ;;  %v5364_v10 = vunpack.i.h.bf16 %v3995_v40  ;;  %v5363_v31 = vunpack.i.l.bf16 %v3995_v40  ;;  %2101 = vmatmul.msk.f32.gmra.mxu3 %vm1261_vm0, %v4176_v33  ;;  %v5580_v58 = vunpack.i.h.bf16 %v3903_v23 }
 0x151   : > { %1398 = vmatpush.msrb.mxu3 %v384_v14  ;;  %1032 = vrot.lane.b32.xlu2 %v2712_v28, %s5506_s12 }
 0x152   : > { %839 = vrot.lane.b32.xlu1 %v4094_v37, %s5509_s26  ;;  %618 = vrot.lane.b32.xlu0 %v4094_v37, %s5486_s24  ;;  %v4182_v19 = vpop.permute.xlu2 %2659  ;;  %v4184_v26 = vpop.permute.xlu1 %2609  ;;  %s5735_s24 = sld [smem:[#allocation69_spill]] }
 0x153   : > { %1345 = vmatpush.msra.mxu2 %v844_v57  ;;  %1399 = vmatpush.msrb.mxu3 %v3454_v1  ;;  %v5359_v59 = vunpack.i.h.bf16 %v4184_v26  ;;  %v5357_v7 = vunpack.i.l.bf16 %v4184_v26  ;;  %v4193_v14 = vpop.permute.xlu0 %2604  ;;  %v5366_v28 = vunpack.i.h.bf16 %v4182_v19  ;;  %v5381_v45 = vunpack.i.l.bf16 %v4182_v19 }
 0x154   : > { %v5365_v18 = vunpack.i.h.bf16 %v4193_v14  ;;  %v5358_v42 = vunpack.i.l.bf16 %v4193_v14 }
 0x155   : > { %1400 = vmatpush.msrb.mxu3 %v3469_v8  ;;  %v827_v1 = vsel %vm5361_vm14, %v5357_v7, %v5359_v59  ;;  %v4221_v8 = vsel %vm756_vm10, %v5381_v45, %v5366_v28  ;;  %v572_v7 = vsel %vm5360_vm8, %v5363_v31, %v5364_v10  ;;  %v4236_v59 = vld [vmem:[%s3222_s21 + $0x78] sm:$0xff]  ;;  %vm5378_vm8 = vcmp.lt.s32.totalorder %v3295_v9, 81 }
 0x156   : > { %v589_v57 = vsel %vm5362_vm7, %v5358_v42, %v5365_v18  ;;  %1346 = vmatpush.msra.mxu2 %v827_v1  ;;  %v5373_v1 = vunpack.i.h.bf16 %v4040_v47  ;;  %v5372_v42 = vunpack.i.l.bf16 %v4040_v47  ;;  %vm5377_vm14 = vcmp.lt.s32.totalorder %v3295_v9, 82 }
 0x157   : > { %1401 = vmatpush.msrb.mxu3 %v3418_v52  ;;  %1315 = vmatpush.msra.mxu1 %v589_v57  ;;  %vm807_vm7 = vcmp.lt.s32.totalorder %v3295_v9, 36  ;;  %v5558_v45 = vunpack.i.l.bf16 %v3957_v6 }
 0x158   : > { %2102 = vmatmul.msk.f32.gmra.mxu3 %vm1261_vm0, %v4236_v59  ;;  %s5736_s4 = smov %s5735_s24 }
 0x159   : > { %1402 = vmatpush.msrb.mxu3 %v3306_v15  ;;  %584 = vrot.lane.b32.xlu2 %v4094_v37, %s5514_s2 }
 0x15a   : > { %822 = vrot.lane.b32.xlu1 %v4094_v37, %s5515_s22  ;;  %601 = vrot.lane.b32.xlu0 %v4094_v37, %s5505_s3  ;;  %v2675_v52 = vpop.permute.xlu2 %2674  ;;  %v4242_v57 = vpop.permute.xlu1 %2624 }
 0x15b   : > { %1316 = vmatpush.msra.mxu1 %v572_v7  ;;  %1403 = vmatpush.msrb.mxu3 %v3366_v36  ;;  %v2677_v15 = vunpack.i.h.bf16 %v2675_v52  ;;  %v2676_v31 = vunpack.i.l.bf16 %v2675_v52  ;;  %v5375_v10 = vunpack.i.h.bf16 %v4242_v57  ;;  %v5371_v18 = vunpack.i.l.bf16 %v4242_v57  ;;  %v4250_v28 = vpop.permute.xlu0 %2619 }
 0x15c   : > { %v5376_v44 = vunpack.i.h.bf16 %v4250_v28  ;;  %v5374_v60 = vunpack.i.l.bf16 %v4250_v28  ;;  %v538_v7 = vsel %vm5377_vm14, %v5372_v42, %v5373_v1  ;;  %v5548_v52 = vunpack.i.h.bf16 %v3834_v32  ;;  %v2713_v1 = vld [vmem:[%s3214_s5 + $0x8] sm:$0xff] }
 0x15d   : > { %1404 = vmatpush.msrb.mxu3 %v3382_v39  ;;  %v555_v36 = vsel %vm5378_vm8, %v5371_v18, %v5375_v10  ;;  %v4276_v39 = vld [vmem:[%s3222_s21] sm:$0xff]  ;;  %v4282_v18 = vsel %vm722_vm6, %v2677_v15, %v5549_v2  ;;  %vm5556_vm14 = vcmp.lt.s32.totalorder %v3295_v9, 119 }
 0x15e   : > { %v4273_v61 = vsel %vm722_vm6, %v5548_v52, %v2676_v31  ;;  %1317 = vmatpush.msra.mxu1 %v555_v36  ;;  %v810_v42 = vsel %vm807_vm7, %v5374_v60, %v5376_v44  ;;  %1290 = vmatmul.f32.vlgmr.msra.gmra.mxu0 %v4276_v39  ;;  %v4293_v52 = vsel %vm722_vm6, %v2676_v31, %v2677_v15  ;;  %v5553_v60 = vunpack.i.h.bf16 %v3957_v6  ;;  %vm5557_vm8 = vmmov %vm5556_vm14 }
 0x15f   : > { %5550 = vst [vmem:[#allocation61_spill] sm:$0xff] %v4293_v52  ;;  %1405 = vmatpush.msrb.mxu3 %v2713_v1  ;;  %1347 = vmatpush.msra.mxu2 %v810_v42  ;;  %vm5554_vm6 = vcmp.lt.s32.totalorder %v3295_v9, 120  ;;  %v5555_v44 = vunpack.i.h.bf16 %v3721_v38  ;;  %v5582_v38 = vld [vmem:[#allocation43_spill] sm:$0xff] }
 0x160   : > { %1318 = vmatpush.msra.mxu1 %v538_v7  ;;  %1406 = vmatmul.f32.vlgmr.msrb.gmra.mxu3 %v4276_v39 }
 0x161   : > { %1506 = vmatpush.msra.mxu3 %v3578_v30  ;;  %550 = vrot.lane.b32.xlu2 %v4094_v37, %s3007_s15 }
 0x162   : > { %567 = vrot.lane.b32.xlu1 %v4094_v37, %s5521_s8  ;;  %805 = vrot.lane.b32.xlu0 %v4094_v37, %s3008_s28  ;;  %v2690_v32 = vpop.permute.xlu2 %2689  ;;  %v4303_v2 = vpop.permute.xlu1 %2639  ;;  %s2118_s28 = sshll.u32 %s5734_s18, 5  ;;  %s2825_s18 = scalar_lea.hbm %s5736_s4, 512 }
 0x163   : > { %5551 = vst [vmem:[#allocation62_spill] sm:$0xff] %v4303_v2  ;;  %1507 = vmatpush.msra.mxu3 %v3692_v16  ;;  %v2692_v31 = vunpack.i.h.bf16 %v2690_v32  ;;  %v2691_v42 = vunpack.i.l.bf16 %v2690_v32  ;;  %v5380_v30 = vunpack.i.h.bf16 %v4303_v2  ;;  %v2641_v1 = vunpack.i.l.bf16 %v4303_v2  ;;  %v4308_v15 = vpop.permute.xlu0 %2634  ;;  %v4321_v32 = vld [vmem:[%s3222_s21 + $0x10] sm:$0xff] }
 0x164   : > { %5552 = vst [vmem:[#allocation63_spill] sm:$0xff] %v4308_v15  ;;  %v5382_v36 = vunpack.i.h.bf16 %v4308_v15  ;;  %v2636_v7 = vunpack.i.l.bf16 %v4308_v15  ;;  %1348 = vmatmul.f32.vlgmr.msra.gmra.mxu2 %v4321_v32  ;;  %v4469_v2 = vld [vmem:[%s3222_s21 + $0x70] sm:$0xff] }
 0x165   : > { %1508 = vmatpush.msra.mxu3 %v3654_v62  ;;  %v4318_v16 = vsel %vm926_vm4, %v5553_v60, %v2691_v42  ;;  %v4327_v10 = vsel %vm5554_vm6, %v2641_v1, %v5380_v30  ;;  %v4342_v21 = vsel %vm926_vm4, %v2691_v42, %v2692_v31  ;;  %v4346_v30 = vld [vmem:[%s3222_s21 + $0x20] sm:$0xff]  ;;  %v4380_v42 = vld [vmem:[%s3222_s21 + $0x30] sm:$0xff] }
 0x166   : > { %v1024_v62 = vsel %vm5556_vm14, %v5555_v44, %v2636_v7  ;;  %v4338_v60 = vsel %vm5557_vm8, %v2636_v7, %v5382_v36  ;;  %v4352_v44 = vsel %vm926_vm4, %v2692_v31, %v5558_v45  ;;  %vm5561_vm14 = vmmov %vm5554_vm6  ;;  %1293 = vmatmul.f32.gmra.mxu0 %v4346_v30  ;;  %vm5564_vm4 = vcmp.lt.s32.totalorder %v3295_v9, 37 }
 0x167   : > { %1509 = vmatpush.msra.mxu3 %v3510_v35  ;;  %1448 = vmatpush.msrb.mxu1 %v1024_v62  ;;  %5559 = vst [vmem:[#allocation64_spill] sm:$0xff] %v4352_v44  ;;  %v1007_v7 = vsel %vm5561_vm14, %v5560_v4, %v2641_v1  ;;  %v4361_v35 = vld [vmem:[%s3222_s21 + $0x8] sm:$0xff]  ;;  %v4391_v1 = vld [vmem:[%s3222_s21 + $0x40] sm:$0xff]  ;;  %v5569_v36 = vunpack.i.l.bf16 %v4182_v19  ;;  %vm5578_vm8 = vcmp.lt.s32.totalorder %v3295_v9, 57  ;;  %vm5581_vm6 = vcmp.lt.s32.totalorder %v3295_v9, 13 }
 0x168   : > { %1319 = vmatmul.f32.vlgmr.msra.gmra.mxu1 %v4361_v35  ;;  %1409 = vmatmul.f32.gmra.mxu3 %v4346_v30  ;;  %vm5587_vm14 = vcmp.lt.s32.totalorder %v3295_v9, 15 }
 0x169   : > { %1510 = vmatpush.msra.mxu3 %v3622_v50  ;;  %1449 = vmatpush.msrb.mxu1 %v1007_v7  ;;  %v4403_v7 = vld [vmem:[%s3222_s21 + $0x28] sm:$0xff] }
 0x16a   : > { %533 = vrot.lane.b32.xlu0 %v4094_v37, %s3006_s13  ;;  %v4365_v6 = vpop.permute.xlu2 %667  ;;  %v4367_v45 = vpop.permute.xlu1 %2654  ;;  %5566 = vst [vmem:[#allocation66_spill] sm:$0xff] %v4403_v7  ;;  %s2125_s13 = sshll.u32 %s5733_s7, 4 }
 0x16b   : > { %5562 = vst [vmem:[#allocation65_spill] sm:$0xff] %v4365_v6  ;;  %1511 = vmatpush.msra.mxu3 %v3584_v49  ;;  %v4371_v4 = vpop.permute.xlu0 %2649  ;;  %1450 = vmatpush.msrb.mxu1 %v4142_v0  ;;  %v5384_v50 = vunpack.i.l.bf16 %v4367_v45  ;;  %v5563_v49 = vunpack.i.h.bf16 %v3598_v27  ;;  %s5136_s11 = sadd.s32 %s2125_s13, %s2118_s28 }
 0x16c   : > { %v5383_v31 = vunpack.i.l.bf16 %v4371_v4  ;;  %1351 = vmatmul.f32.gmra.mxu2 %v4380_v42  ;;  %s2119_s15 = sshll.u32 %s5136_s11, 3 }
 0x16d   : > { %1512 = vmatpush.msra.mxu3 %v3426_v53  ;;  %1451 = vmatpush.msrb.mxu1 %v3347_v24  ;;  %v5565_v53 = vunpack.i.h.bf16 %v3767_v5  ;;  %s1959_s6 = scalar_lea.hbm %s5735_s24, %s2119_s15 }
 0x16e   : > { %v792_v0 = vsel %vm5564_vm4, %v5563_v49, %v5383_v31  ;;  %1296 = vmatmul.f32.gmra.mxu0 %v4391_v1  ;;  %v5570_v31 = vunpack.i.h.bf16 %v3640_v63  ;;  %vm5590_vm4 = vcmp.lt.s32.totalorder %v3295_v9, 58  ;;  %s1962_s12 = sshll.u32 %s1959_s6, 4  ;;  %s1963_s12 = int_to_ptr.hbm [resolvable:$true] %s1962_s12 }
 0x16f   : > { %1513 = vmatpush.msra.mxu3 %v3550_v22  ;;  %1419 = vmatpush.msrb.mxu0 %v792_v0  ;;  %v775_v62 = vsel %vm773_vm12, %v5565_v53, %v5384_v50  ;;  %v5567_v22 = vld [vmem:[#allocation31_spill] sm:$0xff]  ;;  %s2819_s22 = sshra.s32 %s1963_s12, 4  ;;  %s2820_s22 = int_to_ptr.hbm [resolvable:$true] %s2819_s22 }
 0x170   : > { %1452 = vmatpush.msrb.mxu1 %v3473_v12  ;;  %v758_v53 = vsel %vm756_vm10, %v5570_v31, %v5569_v36  ;;  %1412 = vmatmul.f32.gmra.mxu3 %v4391_v1  ;;  %v5571_v36 = vunpack.i.h.bf16 %v3666_v54  ;;  %v4431_v31 = vld [vmem:[%s3222_s21 + $0x50] sm:$0xff]  ;;  %s2821_s8 = scalar_lea.hbm %s2820_s22, 128  ;;  %p2826_p5 = scmp.lt.s32.totalorder %s2820_s22, %s5736_s4 }
 0x171   : > { %1514 = vmatpush.msra.mxu3 %v3504_v34  ;;  %1420 = vmatpush.msrb.mxu0 %v775_v62  ;;  %p2822_p0 = scmp.ne.s32.totalorder %s2820_s22, %s2821_s8  ;;  %p2827_p9 = scmp.lt.s32.totalorder %s2825_s18, %s2821_s8 }
 0x172   : > { %1453 = vmatpush.msrb.mxu1 %v5567_v22  ;;  %v4406_v49 = vpop.permute.xlu2 %871  ;;  %v4408_v0 = vpop.permute.xlu1 %2669 }
 0x173   : > { %5568 = vst [vmem:[#allocation31_spill] sm:$0xff] %v4406_v49  ;;  %1515 = vmatpush.msra.mxu3 %v3347_v24  ;;  %v5385_v34 = vunpack.i.l.bf16 %v4408_v0  ;;  %v4418_v62 = vpop.permute.xlu0 %2664  ;;  %1421 = vmatpush.msrb.mxu0 %v758_v53  ;;  %v5572_v53 = vunpack.i.h.bf16 %v3837_v11  ;;  %p2823_p4 = pnand %p2822_p0, %p3116_p6  ;;  %p2828_p13 = por %p2827_p9, %p2826_p5 }
 0x174   : > { %v5387_v50 = vunpack.i.l.bf16 %v4418_v62  ;;  %1322 = vmatmul.f32.gmra.mxu1 %v4403_v7  ;;  %1354 = vmatmul.f32.gmra.mxu2 %v4431_v31 }
 0x175   : > { %1516 = vmatpush.msra.mxu3 %v3473_v12  ;;  %v962_v24 = vsel %vm960_vm9, %v5571_v36, %v5385_v34  ;;  %v4442_v12 = vld [vmem:[%s3222_s21 + $0x60] sm:$0xff]  ;;  %v5573_v36 = vld [vmem:[#allocation26_spill] sm:$0xff]  ;;  %p2824_p11 = pneg %p2823_p4 }
 0x176   : > { %v741_v44 = vsel %vm739_vm1, %v5572_v53, %v5387_v50  ;;  %1454 = vmatpush.msrb.mxu1 %v962_v24  ;;  %1299 = vmatmul.f32.gmra.mxu0 %v4442_v12  ;;  %v4448_v34 = vld [vmem:[%s3222_s21 + $0x48] sm:$0xff]  ;;  %v5575_v53 = vld [vmem:[#allocation27_spill] sm:$0xff] }
 0x177   : > { %1517 = vmatpush.msra.mxu3 %v5567_v22  ;;  %1422 = vmatpush.msrb.mxu0 %v741_v44  ;;  %5574 = vst [vmem:[#allocation26_spill] sm:$0xff] %v4448_v34  ;;  %p2829_p1 = pnand %p2828_p13, %p2824_p11 }
 0x178   : > { %1415 = vmatmul.f32.gmra.mxu3 %v4442_v12  ;;  %5579 = vst [vmem:[#allocation27_spill] sm:$0xff] %v4469_v2 }
 0x179   : > { %1518 = vmatpush.msra.mxu3 %v5573_v36  ;;  %1423 = vmatpush.msrb.mxu0 %v4273_v61  ;;  %v5576_v61 = vld [vmem:[#allocation29_spill] sm:$0xff]  ;;  %v5577_v36 = vunpack.i.h.bf16 %v3917_v41 }
 0x17a   : > { %v4450_v54 = vpop.permute.xlu2 %616  ;;  %v4452_v24 = vpop.permute.xlu1 %2684 }
 0x17b   : > { %1519 = vmatpush.msra.mxu3 %v5575_v53  ;;  %v5392_v44 = vunpack.i.l.bf16 %v4452_v24  ;;  %v4456_v22 = vpop.permute.xlu0 %2679 }
 0x17c   : > { %v5396_v50 = vunpack.i.l.bf16 %v4456_v22  ;;  %1325 = vmatmul.f32.gmra.mxu1 %v4448_v34  ;;  %1357 = vmatmul.f32.gmra.mxu2 %v4469_v2 }
 0x17d   : > { %1520 = vmatpush.msra.mxu3 %v5576_v61  ;;  %v707_v53 = vsel %vm5578_vm8, %v5577_v36, %v5392_v44  ;;  %v2714_v61 = vld [vmem:[%s3214_s5 + $0x10] sm:$0xff]  ;;  %v4482_v36 = vld [vmem:[%s3222_s21 + $0x68] sm:$0xff]  ;;  %v5584_v44 = vld [vmem:[#allocation44_spill] sm:$0xff]  ;;  %vm5594_vm8 = vcmp.lt.s32.totalorder %v3295_v9, 59  ;;  %s5732_s5 = sld [smem:[#allocation15_spill]] }
 0x17e   : > { %1424 = vmatpush.msrb.mxu0 %v707_v53  ;;  %v945_v15 = vsel %vm5581_vm6, %v5580_v58, %v5396_v50  ;;  %5583 = vst [vmem:[#allocation29_spill] sm:$0xff] %v4482_v36  ;;  %v5585_v50 = vld [vmem:[#allocation41_spill] sm:$0xff]  ;;  %vm5599_vm6 = vcmp.lt.s32.totalorder %v3295_v9, 60 }
 0x17f   : > { %1521 = vmatpush.msra.mxu3 %v2714_v61  ;;  %1455 = vmatpush.msrb.mxu1 %v945_v15  ;;  %v5589_v61 = vunpack.i.h.bf16 %v3710_v29 }
 0x180   : > { %1522 = vmatmul.f32.vlgmr.msra.gmra.mxu3 %v4276_v39 }
 0x181   : > { %1622 = vmatpush.msrb.mxu3 %v5582_v38  ;;  %1456 = vmatpush.msrb.mxu1 %v4318_v16  ;;  %v5586_v38 = vunpack.i.h.bf16 %v3765_v48  ;;  %v5592_v48 = vld [vmem:[#allocation54_spill] sm:$0xff] }
 0x182   : > { %v4485_v53 = vpop.permute.xlu1 %2699  ;;  %v5593_v2 = vunpack.i.h.bf16 %v5592_v48 }
 0x183   : > { %1623 = vmatpush.msrb.mxu3 %v5584_v44  ;;  %v4487_v34 = vpop.permute.xlu2 %599  ;;  %v5402_v23 = vunpack.i.l.bf16 %v4485_v53  ;;  %v4490_v58 = vpop.permute.xlu0 %2694  ;;  %v5588_v44 = vld [vmem:[#allocation39_spill] sm:$0xff]  ;;  %s257_s21 = sand.u32 1, %s5732_s5  }
 0x184   : > { %v5405_v15 = vunpack.i.l.bf16 %v4490_v58  ;;  %1328 = vmatmul.f32.gmra.mxu1 %v4482_v36  ;;  %v5591_v36 = vld [vmem:[#allocation40_spill] sm:$0xff]  ;;  %s2098_s27 = sshll.u32 %s257_s21, 7  ;;  %s1945_s2 = scalar_lea.sflag [#allocation5], %s257_s21 }
 0x185   : > { %1624 = vmatpush.msrb.mxu3 %v5585_v50  ;;  %v911_v16 = vsel %vm5587_vm14, %v5586_v38, %v5402_v23  ;;  %v673_v38 = vsel %vm5594_vm8, %v5593_v2, %v4365_v6  ;;  %v5595_v23 = vld [vmem:[#allocation38_spill] sm:$0xff]  ;;  %v5601_v2 = vld [vmem:[#allocation49_spill] sm:$0xff]  ;;  %vm5603_vm14 = vcmp.lt.s32.totalorder %v3295_v9, 16  ;;  %v5605_v6 = vunpack.i.h.bf16 %v4042_v25  ;;  %s5115_s9 = scalar_lea.vmem [#allocation9], %s2098_s27 }
 0x186   : > { %v690_v50 = vsel %vm5590_vm4, %v5589_v61, %v5405_v15  ;;  %1457 = vmatpush.msrb.mxu1 %v911_v16  ;;  %v5597_v16 = vld [vmem:[#allocation55_spill] sm:$0xff]  ;;  %v5604_v15 = vld [vmem:[#allocation37_spill] sm:$0xff]  ;;  %v5611_v25 = vld [vmem:[#allocation34_spill] sm:$0xff]  ;;  %vm5620_vm4 = vcmp.lt.s32.totalorder %v3295_v9, 118  ;;  %vm5623_vm8 = vcmp.lt.s32.totalorder %v3295_v9, 37  ;;  %s1960_s3 = sshll.u32 %s5115_s9, 4  ;;  %s1961_s3 = int_to_ptr.vmem [resolvable:$true] %s1960_s3 }
 0x187   : > { %1625 = vmatpush.msrb.mxu3 %v5588_v44  ;;  %1425 = vmatpush.msrb.mxu0 %v690_v50  ;;  %v5598_v61 = vunpack.i.h.bf16 %v5597_v16  ;;  %v5600_v50 = vld [vmem:[#allocation36_spill] sm:$0xff] }
 0x188   : > { %1525 = vmatmul.f32.gmra.mxu3 %v4346_v30 }
 0x189   : > { %1626 = vmatpush.msrb.mxu3 %v5591_v36  ;;  %1426 = vmatpush.msrb.mxu0 %v673_v38  ;;  %v5602_v38 = vunpack.i.h.bf16 %v5601_v2 }
 0x18a   : > { %v4516_v44 = vpop.permute.xlu1 %650 }
 0x18b   : > { %1627 = vmatpush.msrb.mxu3 %v5595_v23  ;;  %5596 = vst [vmem:[#allocation43_spill] sm:$0xff] %v4516_v44  ;;  %v4518_v52 = vpop.permute.xlu2 %803  ;;  %v4520_v7 = vpop.permute.xlu0 %888  ;;  %v656_v36 = vsel %vm5599_vm6, %v5598_v61, %v4516_v44  ;;  %v877_v61 = vsel %vm875_vm3, %v5605_v6, %v4406_v49  ;;  %v5612_v6 = vunpack.i.h.bf16 %v4056_v13  ;;  %v5616_v49 = vunpack.i.h.bf16 %v4111_v43 }
 0x18c   : > { %1427 = vmatpush.msrb.mxu0 %v656_v36  ;;  %v894_v23 = vsel %vm5603_vm14, %v5602_v38, %v4520_v7  ;;  %v5607_v36 = vld [vmem:[#allocation33_spill] sm:$0xff]  ;;  %v5417_v13 = vunpack.i.h.bf16 %v4367_v45  ;;  %vm5631_vm6 = vcmp.lt.s32.totalorder %v3295_v9, 35  ;;  %vm5635_vm14 = vcmp.lt.s32.totalorder %v3295_v9, 57 }
 0x18d   : > { %1628 = vmatpush.msrb.mxu3 %v5600_v50  ;;  %1458 = vmatpush.msrb.mxu1 %v894_v23  ;;  %v5606_v50 = vld [vmem:[#allocation35_spill] sm:$0xff] }
 0x18f   : > { %1629 = vmatpush.msrb.mxu3 %v5604_v15  ;;  %1459 = vmatpush.msrb.mxu1 %v877_v61  ;;  %v5610_v15 = vunpack.i.h.bf16 %v4123_v3  ;;  %v5614_v3 = vunpack.i.h.bf16 %v3901_v46 }
 0x190   : > { %1528 = vmatmul.f32.gmra.mxu3 %v4391_v1 }
 0x191   : > { %1630 = vmatpush.msrb.mxu3 %v5606_v50  ;;  %v5613_v50 = vld [vmem:[#allocation32_spill] sm:$0xff] }
 0x192   : > { %v4542_v2 = vpop.permute.xlu1 %854 }
 0x193   : > { %1631 = vmatpush.msrb.mxu3 %v5607_v36  ;;  %5608 = vst [vmem:[#allocation44_spill] sm:$0xff] %v4542_v2  ;;  %v4544_v44 = vpop.permute.xlu2 %531  ;;  %v4546_v38 = vpop.permute.xlu0 %633  ;;  %v860_v23 = vsel %vm858_vm11, %v5610_v15, %v4542_v2  ;;  %v622_v15 = vsel %vm620_vm15, %v5614_v3, %v4450_v54  ;;  %v5615_v2 = vld [vmem:[#allocation25_spill] sm:$0xff]  ;;  %v5618_v3 = vld [vmem:[#allocation30_spill] sm:$0xff] }
 0x194   : > { %5609 = vst [vmem:[#allocation41_spill] sm:$0xff] %v4546_v38  ;;  %v639_v61 = vsel %vm637_vm2, %v5612_v6, %v4546_v38  ;;  %1460 = vmatpush.msrb.mxu1 %v860_v23  ;;  %v605_v23 = vsel %vm603_vm13, %v5616_v49, %v4487_v34  ;;  %v5416_v6 = vunpack.i.h.bf16 %v4371_v4  ;;  %v5621_v49 = vunpack.i.h.bf16 %v3947_v56 }
 0x195   : > { %1632 = vmatpush.msrb.mxu3 %v5611_v25  ;;  %1428 = vmatpush.msrb.mxu0 %v639_v61  ;;  %v5617_v61 = vld [vmem:[#allocation28_spill] sm:$0xff] }
 0x197   : > { %1633 = vmatpush.msrb.mxu3 %v5613_v50  ;;  %1429 = vmatpush.msrb.mxu0 %v622_v15 }
 0x198   : > { %1531 = vmatmul.f32.gmra.mxu3 %v4442_v12 }
 0x199   : > { %1634 = vmatpush.msrb.mxu3 %v5615_v2  ;;  %1430 = vmatpush.msrb.mxu0 %v605_v23  ;;  %v5619_v2 = vunpack.i.h.bf16 %v4002_v51 }
 0x19b   : > { %1635 = vmatpush.msrb.mxu3 %v5617_v61  ;;  %v4574_v38 = vpop.permute.xlu2 %652  ;;  %v1039_v46 = vpop.permute.xlu1 %1038  ;;  %v5622_v61 = vunpack.i.l.bf16 %v3598_v27 }
 0x19c   : > { %v4578_v15 = vpop.permute.xlu0 %837  ;;  %v1041_v43 = vsel %vm5620_vm4, %v5619_v2, %v1039_v46  ;;  %v5624_v2 = vunpack.i.l.bf16 %v3767_v5  ;;  %vm5637_vm4 = vcmp.lt.s32.totalorder %v3295_v9, 58 }
 0x19d   : > { %1636 = vmatpush.msrb.mxu3 %v5618_v3  ;;  %v843_v23 = vsel %vm841_vm5, %v5621_v49, %v4578_v15  ;;  %1492 = vmatpush.msrb.mxu2 %v1041_v43  ;;  %v4597_v3 = vsel %vm5623_vm8, %v5416_v6, %v5622_v61  ;;  %v2667_v43 = vunpack.i.h.bf16 %v4418_v62  ;;  %v5626_v49 = vunpack.i.h.bf16 %v4182_v19 }
 0x19e   : > { %1461 = vmatpush.msrb.mxu1 %v843_v23  ;;  %2103 = vmatmul.msk.f32.vlgmr.msrb.gmra.mxu2 %vm1261_vm0, %v4026_v17  ;;  %v4609_v27 = vsel %vm773_vm12, %v5417_v13, %v5624_v2  ;;  %v5627_v13 = vunpack.i.l.bf16 %v3837_v11  ;;  %v5628_v19 = vunpack.i.h.bf16 %v4193_v14  ;;  %v2697_v6 = vunpack.i.h.bf16 %v4490_v58 }
 0x19f   : > { %1637 = vmatpush.msrb.mxu3 %v4094_v37  ;;  %v5625_v37 = vunpack.i.l.bf16 %v3640_v63  ;;  %vm5639_vm8 = vcmp.lt.s32.totalorder %v3295_v9, 118 }
 0x1a0   : > { %v4634_v63 = vsel %vm739_vm1, %v2667_v43, %v5627_v13  ;;  %1638 = vmatmul.f32.vlgmr.msrb.gmra.mxu3 %v4276_v39  ;;  %v5632_v13 = vunpack.i.h.bf16 %v4250_v28  ;;  %v5636_v39 = vunpack.i.l.bf16 %v3710_v29 }
 0x1a1   : > { %2126 = vmatpush.msra.mxu3 %v4597_v3  ;;  %v4618_v23 = vsel %vm756_vm10, %v5626_v49, %v5625_v37  ;;  %vm5629_vm10 = vcmp.lt.s32.totalorder %v3295_v9, 79  ;;  %v5630_v49 = vunpack.i.h.bf16 %v4184_v26 }
 0x1a3   : > { %2127 = vmatpush.msra.mxu3 %v4609_v27  ;;  %v4621_v61 = vpop.permute.xlu2 %856  ;;  %v4623_v5 = vpop.permute.xlu1 %582 }
 0x1a4   : > { %v4626_v2 = vpop.permute.xlu0 %820  ;;  %v588_v37 = vsel %vm5629_vm10, %v5628_v19, %v4623_v5  ;;  %v809_v19 = vsel %vm807_vm7, %v5632_v13, %v4518_v52  ;;  %v4673_v13 = vsel %vm5637_vm4, %v2697_v6, %v5636_v39  ;;  %vm5640_vm10 = vmmov %vm5639_vm8  ;;  %v5641_v39 = vunpack.i.h.bf16 %v3995_v40 }
 0x1a5   : > { %2128 = vmatpush.msra.mxu3 %v4618_v23  ;;  %1431 = vmatpush.msrb.mxu0 %v588_v37  ;;  %v826_v11 = vsel %vm5631_vm6, %v5630_v49, %v4626_v2  ;;  %v5633_v37 = vunpack.i.l.bf16 %v3917_v41  ;;  %v5634_v49 = vunpack.i.h.bf16 %v4452_v24  ;;  %vm5642_vm6 = vcmp.lt.s32.totalorder %v3295_v9, 80 }
 0x1a6   : > { %1462 = vmatpush.msrb.mxu1 %v826_v11  ;;  %2104 = vmatmul.msk.f32.gmra.mxu2 %vm1261_vm0, %v4101_v55  ;;  %vm5646_vm4 = vcmp.lt.s32.totalorder %v3295_v9, 82 }
 0x1a7   : > { %2129 = vmatpush.msra.mxu3 %v4634_v63  ;;  %v4663_v11 = vsel %vm5635_vm14, %v5634_v49, %v5633_v37  ;;  %v5638_v37 = vunpack.i.l.bf16 %v4002_v51  ;;  %v5643_v51 = vunpack.i.h.bf16 %v4242_v57  ;;  %vm5644_vm14 = vcmp.lt.s32.totalorder %v3295_v9, 81 }
 0x1a8   : > { %1463 = vmatpush.msrb.mxu1 %v809_v19  ;;  %1641 = vmatmul.f32.gmra.mxu3 %v4346_v30  ;;  %v5648_v30 = vunpack.i.l.bf16 %v4371_v4 }
 0x1a9   : > { %2130 = vmatpush.msra.mxu3 %v4282_v18  ;;  %1464 = vmatmul.f32.vlgmr.msrb.gmra.mxu1 %v4321_v32 }
 0x1aa   : > { %1564 = vmatpush.msra.mxu1 %v4338_v60 }
 0x1ab   : > { %2131 = vmatpush.msra.mxu3 %v4663_v11  ;;  %v1033_v41 = vpop.permute.xlu2 %1032  ;;  %v4678_v19 = vpop.permute.xlu1 %548 }
 0x1ac   : > { %1565 = vmatpush.msra.mxu1 %v4327_v10  ;;  %v1043_v29 = vsel %vm5639_vm8, %v1033_v41, %v5638_v37  ;;  %v1044_v60 = vsel %vm5640_vm10, %v1039_v46, %v1033_v41  ;;  %v4686_v49 = vpop.permute.xlu0 %565  ;;  %v554_v46 = vsel %vm5644_vm14, %v5643_v51, %v4678_v19  ;;  %v2672_v41 = vunpack.i.h.bf16 %v4408_v0 }
 0x1ad   : > { %2132 = vmatpush.msra.mxu3 %v4673_v13  ;;  %v571_v10 = vsel %vm5642_vm6, %v5641_v39, %v4686_v49  ;;  %1608 = vmatpush.msra.mxu2 %v1044_v60  ;;  %v2682_v37 = vunpack.i.h.bf16 %v4456_v22  ;;  %vm5649_vm8 = vcmp.lt.s32.totalorder %v3295_v9, 37  ;;  %vm5654_vm10 = vcmp.lt.s32.totalorder %v3295_v9, 59 }
 0x1ae   : > { %1566 = vmatpush.msra.mxu1 %v4158_v20  ;;  %1432 = vmatpush.msrb.mxu0 %v571_v10  ;;  %v5645_v20 = vunpack.i.h.bf16 %v4040_v47  ;;  %v5650_v10 = vunpack.i.l.bf16 %v4408_v0  ;;  %vm5656_vm6 = vcmp.lt.s32.totalorder %v3295_v9, 13  ;;  %vm5661_vm14 = vcmp.lt.s32.totalorder %v3295_v9, 15 }
 0x1af   : > { %1724 = vmatpush.msrb.mxu2 %v1043_v29  ;;  %v5647_v29 = vunpack.i.h.bf16 %v4371_v4  ;;  %v5652_v4 = vunpack.i.l.bf16 %v4367_v45 }
 0x1b0   : > { %1567 = vmatpush.msra.mxu1 %v5607_v36  ;;  %2105 = vmatmul.msk.f32.gmra.mxu2 %vm1261_vm0, %v4176_v33  ;;  %v537_v36 = vsel %vm5646_vm4, %v5645_v20, %v4544_v44  ;;  %v961_v51 = vsel %vm960_vm9, %v5650_v10, %v2672_v41  ;;  %v5659_v10 = vunpack.i.l.bf16 %v4418_v62  ;;  %vm5669_vm4 = vcmp.lt.s32.totalorder %v3295_v9, 57 }
 0x1b1   : > { %1433 = vmatpush.msrb.mxu0 %v554_v46  ;;  %1467 = vmatmul.f32.gmra.mxu1 %v4380_v42  ;;  %v5651_v46 = vunpack.i.h.bf16 %v4367_v45 }
 0x1b2   : > { %1568 = vmatpush.msra.mxu1 %v5611_v25  ;;  %v791_v25 = vsel %vm5649_vm8, %v5648_v30, %v5647_v29  ;;  %v5655_v29 = vunpack.i.l.bf16 %v4456_v22  ;;  %v5657_v30 = vunpack.i.l.bf16 %v5597_v16  ;;  %v740_v16 = vsel %vm739_vm1, %v5659_v10, %v2667_v43  ;;  %1644 = vmatmul.f32.gmra.mxu3 %v4391_v1  ;;  %v5665_v1 = vld [vmem:[#allocation57_spill] sm:$0xff]  ;;  %v5670_v10 = vld [vmem:[#allocation31_spill] sm:$0xff] }
 0x1b3   : > { %1434 = vmatpush.msrb.mxu0 %v537_v36  ;;  %v774_v20 = vsel %vm773_vm12, %v5652_v4, %v5651_v46  ;;  %vm5658_vm12 = vcmp.lt.s32.totalorder %v3295_v9, 60  ;;  %v5662_v46 = vld [vmem:[#allocation66_spill] sm:$0xff]  ;;  %v5663_v4 = vld [vmem:[#allocation61_spill] sm:$0xff]  ;;  %vm5664_vm1 = vcmp.lt.s32.totalorder %v3295_v9, 16  ;;  %vm5672_vm8 = vcmp.lt.s32.totalorder %v3295_v9, 58  ;;  %v5718_v22 = vld [vmem:[#allocation47_spill] sm:$0xff] }
 0x1b4   : > { %1435 = vmatmul.f32.vlgmr.msrb.gmra.mxu0 %v4361_v35  ;;  %1569 = vmatpush.msra.mxu1 %v5613_v50  ;;  %v4720_v60 = vpop.permute.xlu1 %890  ;;  %v670_v39 = vpop.permute.xlu0 %669  ;;  %v5653_v50 = vunpack.i.l.bf16 %v5592_v48  ;;  %v944_v45 = vsel %vm5656_vm6, %v5655_v29, %v2682_v37  ;;  %v4752_v48 = vsel %vm5658_vm12, %v4574_v38, %v5657_v30  ;;  %v5667_v29 = vunpack.i.h.bf16 %v4452_v24  ;;  %vm5678_vm6 = vmmov %vm5658_vm12 }
 0x1b5   : > { %1535 = vmatpush.msra.mxu0 %v791_v25  ;;  %v2702_v25 = vunpack.i.h.bf16 %v4485_v53 }
 0x1b6   : > { %1570 = vmatpush.msra.mxu1 %v961_v51  ;;  %v4738_v36 = vsel %vm5654_vm10, %v670_v39, %v5653_v50  ;;  %v5660_v51 = vunpack.i.l.bf16 %v4485_v53  ;;  %v5724_v53 = vld [vmem:[#allocation56_spill] sm:$0xff] }
 0x1b7   : > { %1536 = vmatpush.msra.mxu0 %v774_v20  ;;  %2133 = vmatpush.msra.mxu3 %v4738_v36  ;;  %v5666_v20 = vunpack.i.l.bf16 %v5665_v1  ;;  %v5677_v1 = vld [vmem:[#allocation43_spill] sm:$0xff] }
 0x1b8   : > { %1571 = vmatpush.msra.mxu1 %v944_v45  ;;  %2106 = vmatmul.msk.f32.gmra.mxu2 %vm1261_vm0, %v4236_v59  ;;  %v5668_v45 = vunpack.i.l.bf16 %v4452_v24  ;;  %v5673_v24 = vld [vmem:[#allocation44_spill] sm:$0xff] }
 0x1b9   : > { %1537 = vmatpush.msra.mxu0 %v4221_v8  ;;  %2134 = vmatpush.msra.mxu3 %v4752_v48  ;;  %v910_v8 = vsel %vm5661_vm14, %v5660_v51, %v2702_v25 }
 0x1ba   : > { %1572 = vmatpush.msra.mxu1 %v4342_v21  ;;  %v893_v21 = vsel %vm5664_vm1, %v4520_v7, %v4720_v60  ;;  %v706_v30 = vsel %vm5669_vm4, %v5668_v45, %v5667_v29  ;;  %1647 = vmatmul.f32.gmra.mxu3 %v4442_v12  ;;  %vm5696_vm1 = vcmp.lt.s32.totalorder %v3295_v9, 119  ;;  %vm5697_vm4 = vcmp.lt.s32.totalorder %v3295_v9, 81 }
 0x1bb   : > { %1538 = vmatpush.msra.mxu0 %v740_v16  ;;  %1470 = vmatmul.f32.gmra.mxu1 %v4431_v31  ;;  %v5671_v16 = vunpack.i.l.bf16 %v4490_v58  ;;  %v5675_v58 = vld [vmem:[#allocation27_spill] sm:$0xff] }
 0x1bc   : > { %1438 = vmatmul.f32.gmra.mxu0 %v5662_v46  ;;  %1573 = vmatpush.msra.mxu1 %v910_v8  ;;  %v636_v62 = vpop.permute.xlu1 %635  ;;  %v4776_v43 = vpop.permute.xlu0 %873  ;;  %v859_v8 = vsel %vm858_vm11, %v5673_v24, %v4621_v61 }
 0x1bd   : > { %1539 = vmatpush.msra.mxu0 %v5663_v4  ;;  %v4786_v50 = vsel %vm637_vm2, %v636_v62, %v5666_v20  ;;  %v876_v7 = vsel %vm875_vm3, %v5670_v10, %v4776_v43  ;;  %v689_v51 = vsel %vm5672_vm8, %v5671_v16, %v2697_v6  ;;  %v5674_v4 = vld [vmem:[#allocation65_spill] sm:$0xff]  ;;  %v5676_v6 = vld [vmem:[#allocation26_spill] sm:$0xff]  ;;  %v655_v20 = vsel %vm5678_vm6, %v5677_v1, %v4574_v38  ;;  %v5680_v10 = vld [vmem:[#allocation52_spill] sm:$0xff] }
 0x1be   : > { %1574 = vmatpush.msra.mxu1 %v893_v21  ;;  %2135 = vmatpush.msra.mxu3 %v4786_v50  ;;  %v672_v21 = vsel %vm5654_vm10, %v5674_v4, %v670_v39  ;;  %v5684_v4 = vld [vmem:[#allocation58_spill] sm:$0xff]  ;;  %vm5699_vm8 = vmmov %vm5697_vm4  ;;  %vm5704_vm10 = vcmp.lt.s32.totalorder %v3295_v9, 120  ;;  %vm5706_vm6 = vcmp.lt.s32.totalorder %v3295_v9, 82 }
 0x1bf   : > { %1540 = vmatpush.msra.mxu0 %v706_v30  ;;  %v5679_v30 = vld [vmem:[#allocation41_spill] sm:$0xff] }
 0x1c0   : > { %1575 = vmatpush.msra.mxu1 %v876_v7  ;;  %2107 = vmatmul.msk.f32.vlgmr.msra.gmra.mxu2 %vm1261_vm0, %v4026_v17  ;;  %v638_v39 = vsel %vm637_vm2, %v5679_v30, %v636_v62  ;;  %v5681_v7 = vunpack.i.l.bf16 %v5680_v10  ;;  %v585_v62 = vpop.permute.xlu2 %584  ;;  %vm5683_vm2 = vcmp.lt.s32.totalorder %v3295_v9, 35 }
 0x1c1   : > { %1541 = vmatpush.msra.mxu0 %v689_v51 }
 0x1c2   : > { %1576 = vmatpush.msra.mxu1 %v859_v8 }
 0x1c3   : > { %1542 = vmatpush.msra.mxu0 %v672_v21  ;;  %1473 = vmatmul.f32.gmra.mxu1 %v5675_v58  ;;  %v5685_v21 = vunpack.i.l.bf16 %v5684_v4 }
 0x1c4   : > { %1441 = vmatmul.f32.gmra.mxu0 %v5676_v6  ;;  %v4821_v29 = vpop.permute.xlu1 %839  ;;  %v619_v45 = vpop.permute.xlu0 %618 }
 0x1c5   : > { %1543 = vmatpush.msra.mxu0 %v655_v20  ;;  %v842_v12 = vsel %vm841_vm5, %v4578_v15, %v4821_v29  ;;  %v4834_v16 = vsel %vm620_vm15, %v619_v45, %v5681_v7  ;;  %v621_v38 = vsel %vm620_vm15, %v4450_v54, %v619_v45  ;;  %v5682_v15 = vld [vmem:[#allocation29_spill] sm:$0xff]  ;;  %vm5686_vm15 = vcmp.lt.s32.totalorder %v3295_v9, 79  ;;  %v5692_v7 = vld [vmem:[#allocation46_spill] sm:$0xff] }
 0x1c6   : > { %1577 = vmatpush.msra.mxu1 %v842_v12  ;;  %2136 = vmatpush.msra.mxu3 %v4834_v16  ;;  %v587_v20 = vsel %vm5686_vm15, %v4623_v5, %v585_v62  ;;  %vm5688_vm12 = vmmov %vm5686_vm15  ;;  %vm5716_vm15 = vcmp.lt.s32.totalorder %v3295_v9, 13 }
 0x1c7   : > { %1544 = vmatpush.msra.mxu0 %v638_v39 }
 0x1c8   : > { %2108 = vmatmul.msk.f32.gmra.mxu2 %vm1261_vm0, %v4101_v55  ;;  %v551_v45 = vpop.permute.xlu2 %550 }
 0x1c9   : > { %1545 = vmatpush.msra.mxu0 %v621_v38  ;;  %v5693_v38 = vunpack.i.l.bf16 %v5692_v7 }
 0x1cc   : > { %1444 = vmatmul.f32.gmra.mxu0 %v5682_v15  ;;  %v4843_v51 = vpop.permute.xlu1 %822  ;;  %v602_v24 = vpop.permute.xlu0 %601 }
 0x1cd   : > { %v604_v8 = vsel %vm603_vm13, %v4487_v34, %v602_v24  ;;  %v825_v54 = vsel %vm5683_vm2, %v4626_v2, %v4843_v51  ;;  %v4856_v1 = vsel %vm603_vm13, %v602_v24, %v5685_v21  ;;  %v5687_v34 = vunpack.i.l.bf16 %v4193_v14  ;;  %v5702_v21 = vld [vmem:[#allocation62_spill] sm:$0xff]  ;;  %vm5708_vm2 = vmmov %vm5706_vm6 }
 0x1ce   : > { %1546 = vmatpush.msra.mxu0 %v604_v8  ;;  %1578 = vmatpush.msra.mxu1 %v825_v54  ;;  %vm5689_vm13 = vcmp.lt.s32.totalorder %v3295_v9, 80  ;;  %v5690_v14 = vunpack.i.l.bf16 %v3995_v40  ;;  %v553_v40 = vsel %vm5697_vm4, %v4678_v19, %v551_v45  ;;  %v5700_v54 = vld [vmem:[#allocation45_spill] sm:$0xff]  ;;  %v5705_v19 = vld [vmem:[#allocation60_spill] sm:$0xff] }
 0x1cf   : > { %2137 = vmatpush.msra.mxu3 %v4856_v1  ;;  %v4868_v2 = vsel %vm5688_vm12, %v585_v62, %v5687_v34  ;;  %vm5691_vm14 = vmmov %vm5689_vm13  ;;  %v5701_v4 = vunpack.i.l.bf16 %v5700_v54  ;;  %vm5723_vm12 = vcmp.lt.s32.totalorder %v3295_v9, 16  ;;  %v5725_v54 = vunpack.i.l.bf16 %v5724_v53 }
 0x1d0   : > { %2109 = vmatmul.msk.f32.gmra.mxu2 %vm1261_vm0, %v4176_v33  ;;  %1547 = vmatpush.msra.mxu0 %v587_v20  ;;  %v5703_v20 = vunpack.i.h.bf16 %v5702_v21 }
 0x1d1   : > { %2138 = vmatpush.msra.mxu3 %v4868_v2 }
 0x1d2   : > { %v1009_v34 = vsel %vm5704_vm10, %v5703_v20, %v5701_v4  ;;  %v5728_v20 = vunpack.i.l.bf16 %v3947_v56  ;;  %v5731_v56 = vunpack.i.l.bf16 %v4250_v28 }
 0x1d4   : > { %v568_v30 = vpop.permute.xlu1 %567  ;;  %v4871_v39 = vpop.permute.xlu0 %805 }
 0x1d5   : > { %v570_v5 = vsel %vm5689_vm13, %v4686_v49, %v568_v30  ;;  %v808_v12 = vsel %vm807_vm7, %v4518_v52, %v4871_v39  ;;  %v4884_v10 = vsel %vm5691_vm14, %v568_v30, %v5690_v14  ;;  %v5694_v49 = vld [vmem:[#allocation63_spill] sm:$0xff]  ;;  %v5698_v52 = vunpack.i.l.bf16 %v4242_v57  ;;  %v5710_v14 = vld [vmem:[#allocation50_spill] sm:$0xff] }
 0x1d6   : > { %1548 = vmatpush.msra.mxu0 %v570_v5  ;;  %1579 = vmatpush.msra.mxu1 %v808_v12  ;;  %v5695_v62 = vunpack.i.h.bf16 %v5694_v49  ;;  %v5707_v30 = vunpack.i.l.bf16 %v4040_v47  ;;  %v5709_v12 = vld [vmem:[#allocation48_spill] sm:$0xff]  ;;  %v5711_v47 = vld [vmem:[#allocation51_spill] sm:$0xff] }
 0x1d7   : > { %2139 = vmatpush.msra.mxu3 %v4884_v10  ;;  %1580 = vmatmul.f32.vlgmr.msra.gmra.mxu1 %v4321_v32  ;;  %v4901_v8 = vsel %vm5699_vm8, %v551_v45, %v5698_v52  ;;  %v5717_v49 = vld [vmem:[#allocation64_spill] sm:$0xff] }
 0x1d8   : > { %v1026_v24 = vsel %vm5696_vm1, %v5695_v62, %v5693_v38  ;;  %1549 = vmatpush.msra.mxu0 %v553_v40  ;;  %2110 = vmatmul.msk.f32.gmra.mxu2 %vm1261_vm0, %v4236_v59  ;;  %v5714_v38 = vld [vmem:[#allocation53_spill] sm:$0xff] }
 0x1d9   : > { %1680 = vmatpush.msrb.mxu1 %v1026_v24  ;;  %2140 = vmatpush.msra.mxu3 %v4901_v8  ;;  %v5721_v40 = vld [vmem:[#allocation49_spill] sm:$0xff] }
 0x1da   : > { %v5722_v52 = vunpack.i.l.bf16 %v5721_v40 }
 0x1db   : > { %1681 = vmatpush.msrb.mxu1 %v1009_v34  ;;  %v1291_v0 = vpop.f32.mrf.mxu0 }
 0x1dc   : > { %v534_v57 = vpop.permute.xlu0 %533 }
 0x1dd   : > { %1682 = vmatpush.msrb.mxu1 %v5705_v19  ;;  %v536_v45 = vsel %vm5706_vm6, %v4544_v44, %v534_v57  ;;  %v4920_v5 = vsel %vm5708_vm2, %v534_v57, %v5707_v30  ;;  %v5712_v44 = vld [vmem:[#allocation42_spill] sm:$0xff] }
 0x1de   : > { %1550 = vmatpush.msra.mxu0 %v536_v45  ;;  %2141 = vmatpush.msra.mxu3 %v4920_v5  ;;  %v5713_v7 = vunpack.i.l.bf16 %v5712_v44 }
 0x1df   : > { %1683 = vmatpush.msrb.mxu1 %v5709_v12  ;;  %1551 = vmatmul.f32.vlgmr.msra.gmra.mxu0 %v4361_v35 }
 0x1e0   : > { %1583 = vmatmul.f32.gmra.mxu1 %v4380_v42  ;;  %1651 = vmatpush.msrb.mxu0 %v4597_v3  ;;  %v964_v3 = vsel %vm960_vm9, %v2672_v41, %v5713_v7  ;;  %vm5720_vm9 = vcmp.lt.s32.totalorder %v3295_v9, 15 }
 0x1e1   : > { %1684 = vmatpush.msrb.mxu1 %v5710_v14  ;;  %2111 = vmatmul.msk.f32.vlgmr.msrb.gmra.mxu2 %vm1261_vm0, %v4026_v17  ;;  %v5715_v17 = vunpack.i.l.bf16 %v5714_v38 }
 0x1e2   : > { %1652 = vmatpush.msrb.mxu0 %v4609_v27  ;;  %1676 = vmatmul.f32.vlgmr.msra.gmra.mxu3 %v5682_v15 }
 0x1e3   : > { %1685 = vmatpush.msrb.mxu1 %v5711_v47  ;;  %v947_v27 = vsel %vm5716_vm15, %v2682_v37, %v5715_v17  ;;  %v5719_v37 = vunpack.i.l.bf16 %v5718_v22 }
 0x1e4   : > { %1653 = vmatpush.msrb.mxu0 %v4618_v23  ;;  %v1378_v23 = vpop.f32.mrf.mxu3 }
 0x1e5   : > { %1686 = vmatpush.msrb.mxu1 %v964_v3  ;;  %v1320_v41 = vpop.f32.mrf.mxu1  ;;  %v913_v62 = vsel %vm5720_vm9, %v2702_v25, %v5719_v37  ;;  %v879_v25 = vsel %vm875_vm3, %v4776_v43, %v5725_v54  ;;  %vm5730_vm3 = vcmp.lt.s32.totalorder %v3295_v9, 35 }
 0x1e6   : > { %1654 = vmatpush.msrb.mxu0 %v4634_v63  ;;  %v1321_v63 = vadd.f32 %v1320_v41, %v1291_v0 }
 0x1e7   : > { %1687 = vmatpush.msrb.mxu1 %v947_v27  ;;  %1554 = vmatmul.f32.gmra.mxu0 %v5662_v46  ;;  %v1349_v24 = vpop.f32.mrf.mxu2 }
 0x1e8   : > { %1586 = vmatmul.f32.gmra.mxu1 %v4431_v31  ;;  %1655 = vmatpush.msrb.mxu0 %v4282_v18  ;;  %v1350_v18 = vadd.f32 %v1349_v24, %v1321_v63 }
 0x1e9   : > { %1688 = vmatpush.msrb.mxu1 %v5717_v49  ;;  %2112 = vmatmul.msk.f32.gmra.mxu2 %vm1261_vm0, %v4101_v55  ;;  %v896_v55 = vsel %vm5723_vm12, %v4720_v60, %v5722_v52 }
 0x1ea   : > { %1656 = vmatpush.msrb.mxu0 %v4663_v11  ;;  %v4966_v11 = vadd.f32 %v1378_v23, %v1350_v18 }
 0x1eb   : > { %1689 = vmatpush.msrb.mxu1 %v913_v62 }
 0x1ec   : > { %1657 = vmatpush.msrb.mxu0 %v4673_v13  ;;  %v5726_v13 = vld [vmem:[#allocation59_spill] sm:$0xff]  ;;  %v1381_v21 = vpop.f32.mrf.mxu3 }
 0x1ed   : > { %1690 = vmatpush.msrb.mxu1 %v896_v55  ;;  %v5727_v60 = vunpack.i.l.bf16 %v5726_v13 }
 0x1ee   : > { %1658 = vmatpush.msrb.mxu0 %v4738_v36  ;;  %v1294_v36 = vpop.f32.mrf.mxu0 }
 0x1ef   : > { %1691 = vmatpush.msrb.mxu1 %v879_v25  ;;  %1557 = vmatmul.f32.gmra.mxu0 %v5676_v6  ;;  %v862_v4 = vsel %vm858_vm11, %v4621_v61, %v5727_v60  ;;  %v1352_v19 = vpop.f32.mrf.mxu2  ;;  %v5729_v61 = vunpack.i.l.bf16 %v4184_v26 }
 0x1f0   : > { %1589 = vmatmul.f32.gmra.mxu1 %v5675_v58  ;;  %1659 = vmatpush.msrb.mxu0 %v4752_v48  ;;  %v845_v48 = vsel %vm841_vm5, %v4821_v29, %v5728_v20 }
 0x1f1   : > { %1692 = vmatpush.msrb.mxu1 %v862_v4  ;;  %2113 = vmatmul.msk.f32.gmra.mxu2 %vm1261_vm0, %v4176_v33  ;;  %v1323_v43 = vpop.f32.mrf.mxu1  ;;  %v828_v33 = vsel %vm5730_vm3, %v4843_v51, %v5729_v61 }
 0x1f2   : > { %1660 = vmatpush.msrb.mxu0 %v4786_v50  ;;  %v1324_v34 = vadd.f32 %v1323_v43, %v1294_v36  ;;  %v811_v50 = vsel %vm807_vm7, %v4871_v39, %v5731_v56 }
 0x1f3   : > { %1693 = vmatpush.msrb.mxu1 %v845_v48 }
 0x1f4   : > { %1661 = vmatpush.msrb.mxu0 %v4834_v16  ;;  %v1353_v57 = vadd.f32 %v1352_v19, %v1324_v34  ;;  %v1384_v9 = vpop.f32.mrf.mxu3 }
 0x1f5   : > { %1694 = vmatpush.msrb.mxu1 %v828_v33 }
 0x1f6   : > { %1662 = vmatpush.msrb.mxu0 %v4856_v1  ;;  %v5002_v29 = vadd.f32 %v1381_v21, %v1353_v57  ;;  %v1297_v26 = vpop.f32.mrf.mxu0 }
 0x1f7   : > { %1695 = vmatpush.msrb.mxu1 %v811_v50  ;;  %1560 = vmatmul.f32.gmra.mxu0 %v5682_v15  ;;  %v1355_v51 = vpop.f32.mrf.mxu2  ;;  %v1738_v50 = vld [vmem:[#allocation8] sm:$0xf] }
 0x1f8   : > { %1663 = vmatpush.msrb.mxu0 %v4868_v2  ;;  %1696 = vmatmul.f32.vlgmr.msrb.gmra.mxu1 %v4321_v32 }
 0x1f9   : > { %2114 = vmatmul.msk.f32.gmra.mxu2 %vm1261_vm0, %v4236_v59  ;;  %v1326_v16 = vpop.f32.mrf.mxu1 }
 0x1fa   : > { %1664 = vmatpush.msrb.mxu0 %v4884_v10  ;;  %v1327_v28 = vadd.f32 %v1326_v16, %v1297_v26  ;;  %v1741_v16 = vperm.slane %v1738_v50, 1 }
 0x1fc   : > { %1665 = vmatpush.msrb.mxu0 %v4901_v8  ;;  %v1356_v1 = vadd.f32 %v1355_v51, %v1327_v28  ;;  %v1387_v10 = vpop.f32.mrf.mxu3  ;;  %v1740_v51 = vperm.slane %v1738_v50, 0 }
 0x1fe   : > { %1666 = vmatpush.msrb.mxu0 %v4920_v5  ;;  %v5012_v15 = vadd.f32 %v1384_v9, %v1356_v1  ;;  %v1300_v32 = vpop.f32.mrf.mxu0 }
 0x1ff   : > { %1667 = vmatmul.f32.vlgmr.msrb.gmra.mxu0 %v4361_v35  ;;  %v1358_v39 = vpop.f32.mrf.mxu2 }
 0x200   : > { %1699 = vmatmul.f32.gmra.mxu1 %v4380_v42 }
 0x201   : > { %v1329_v2 = vpop.f32.mrf.mxu1 }
 0x202   : > { %v1330_v59 = vadd.f32 %v1329_v2, %v1300_v32  ;;  %v5034_v32 = vperm.slane %v1738_v50, 2 }
 0x204   : > { %v1359_v45 = vadd.f32 %v1358_v39, %v1330_v59  ;;  %v1407_v8 = vpop.f32.mrf.mxu3 }
 0x206   : > { %v5016_v30 = vadd.f32 %v1387_v10, %v1359_v45  ;;  %v1748_v10 = vmul.f32 %v1740_v51, %v4966_v11 }
 0x207   : > { %1670 = vmatmul.f32.gmra.mxu0 %v5662_v46 }
 0x208   : > { %1702 = vmatmul.f32.gmra.mxu1 %v4431_v31 }
 0x20c   : > { %v1410_v35 = vpop.f32.mrf.mxu3 }
 0x20f   : > { %1673 = vmatmul.f32.gmra.mxu0 %v5676_v6 }
 0x210   : > { %1705 = vmatmul.f32.gmra.mxu1 %v5675_v58 }
 0x214   : > { %v1413_v42 = vpop.f32.mrf.mxu3 }
 0x21c   : > { %v1416_v47 = vpop.f32.mrf.mxu3 }
 0x221   : > { %v1494_v5 = vpop.f32.mrf.mxu2 }
 0x224   : > { %v1523_v23 = vpop.f32.mrf.mxu3 }
 0x226   : > { %v1465_v14 = vpop.f32.mrf.mxu1 }
 0x229   : > { %v1497_v12 = vpop.f32.mrf.mxu2 }
 0x22c   : > { %v1526_v37 = vpop.f32.mrf.mxu3 }
 0x22e   : > { %v1468_v46 = vpop.f32.mrf.mxu1 }
 0x231   : > { %v1436_v44 = vpop.f32.mrf.mxu0 }
 0x232   : > { %v1437_v7 = vadd.f32 %v1436_v44, %v1407_v8 }
 0x233   : > { %v1500_v17 = vpop.f32.mrf.mxu2 }
 0x234   : > { %v1466_v3 = vadd.f32 %v1465_v14, %v1437_v7  ;;  %v1529_v40 = vpop.f32.mrf.mxu3 }
 0x236   : > { %v5022_v38 = vadd.f32 %v1494_v5, %v1466_v3 }
 0x238   : > { %v1471_v49 = vpop.f32.mrf.mxu1  ;;  %v1749_v59 = vmul.f32 %v1741_v16, %v5022_v38 }
 0x239   : > { %v1439_v27 = vpop.f32.mrf.mxu0 }
 0x23a   : > { %v1440_v31 = vadd.f32 %v1439_v27, %v1410_v35  ;;  %v1764_v3 = vadd.f32 %v1749_v59, %v1748_v10 }
 0x23b   : > { %v5026_v58 = vpop.f32.mrf.mxu2 }
 0x23c   : > { %v1469_v6 = vadd.f32 %v1468_v46, %v1440_v31  ;;  %v1532_v54 = vpop.f32.mrf.mxu3 }
 0x23e   : > { %v5024_v0 = vadd.f32 %v1497_v12, %v1469_v6  ;;  %v1743_v12 = vperm.slane %v1738_v50, 3 }
 0x240   : > { %v1474_v18 = vpop.f32.mrf.mxu1 }
 0x241   : > { %v1442_v41 = vpop.f32.mrf.mxu0 }
 0x242   : > { %v1443_v63 = vadd.f32 %v1442_v41, %v1413_v42 }
 0x243   : > { %v1610_v24 = vpop.f32.mrf.mxu2 }
 0x244   : > { %v1472_v22 = vadd.f32 %v1471_v49, %v1443_v63  ;;  %v1639_v4 = vpop.f32.mrf.mxu3  ;;  %v1785_v49 = vmul.f32 %v1749_v59, %v5022_v38  ;;  %v1753_v63 = vmul.f32 %v1741_v16, %v5024_v0 }
 0x246   : > { %v5028_v62 = vadd.f32 %v1500_v17, %v1472_v22 }
 0x249   : > { %v1445_v55 = vpop.f32.mrf.mxu0 }
 0x24a   : > { %v1446_v8 = vadd.f32 %v1445_v55, %v1416_v47  ;;  %v1784_v55 = vmul.f32 %v1748_v10, %v4966_v11 }
 0x24b   : > { %v1613_v52 = vpop.f32.mrf.mxu2 }
 0x24c   : > { %v1642_v20 = vpop.f32.mrf.mxu3  ;;  %v1475_v17 = vadd.f32 %v1474_v18, %v1446_v8  ;;  %v1752_v18 = vmul.f32 %v1740_v51, %v5002_v29  ;;  %v1756_v8 = vmul.f32 %v1740_v51, %v5012_v15 }
 0x253   : > { %v5030_v25 = vpop.f32.mrf.mxu2 }
 0x254   : > { %v1581_v53 = vpop.f32.mrf.mxu1  ;;  %v1645_v56 = vpop.f32.mrf.mxu3 }
 0x25b   : > { %v1619_v43 = vpop.f32.mrf.mxu2 }
 0x25c   : > { %v1552_v13 = vpop.f32.mrf.mxu0  ;;  %v1648_v42 = vpop.f32.mrf.mxu3 }
 0x25d   : > { %v1584_v60 = vpop.f32.mrf.mxu1  ;;  %v1553_v61 = vadd.f32 %v1552_v13, %v1523_v23 }
 0x25f   : > { %v1582_v26 = vadd.f32 %v1581_v53, %v1553_v61 }
 0x261   : > { %v5032_v9 = vadd.f32 %v1610_v24, %v1582_v26 }
 0x263   : > { %v1750_v14 = vmul.f32 %v5034_v32, %v5032_v9 }
 0x264   : > { %v1555_v36 = vpop.f32.mrf.mxu0  ;;  %v1726_v19 = vpop.f32.mrf.mxu2 }
 0x265   : > { %v1587_v21 = vpop.f32.mrf.mxu1  ;;  %v1556_v1 = vadd.f32 %v1555_v36, %v1526_v37  ;;  %v1765_v6 = vadd.f32 %v1764_v3, %v1750_v14  ;;  %v1786_v13 = vmul.f32 %v1750_v14, %v5032_v9  ;;  %v1677_v36 = vpop.f32.mrf.mxu3 }
 0x267   : > { %v1585_v35 = vadd.f32 %v1584_v60, %v1556_v1 }
 0x269   : > { %v5042_v46 = vadd.f32 %v1613_v52, %v1585_v35  ;;  %v5050_v52 = vadd.f32 %v5026_v58, %v1475_v17 }
 0x26b   : > { %v1761_v58 = vmul.f32 %v1741_v16, %v5050_v52 }
 0x26c   : > { %v1558_v48 = vpop.f32.mrf.mxu0  ;;  %v1729_v28 = vpop.f32.mrf.mxu2 }
 0x26d   : > { %v1590_v34 = vpop.f32.mrf.mxu1  ;;  %v1559_v27 = vadd.f32 %v1558_v48, %v1529_v40 }
 0x26f   : > { %v1588_v40 = vadd.f32 %v1587_v21, %v1559_v27 }
 0x271   : > { %v5062_v21 = vadd.f32 %v5030_v25, %v1588_v40  ;;  %v1797_v25 = vmul.f32 %v1761_v58, %v5050_v52 }
 0x274   : > { %v1561_v33 = vpop.f32.mrf.mxu0  ;;  %v1732_v31 = vpop.f32.mrf.mxu2 }
 0x275   : > { %v1697_v57 = vpop.f32.mrf.mxu1  ;;  %v1562_v44 = vadd.f32 %v1561_v33, %v1532_v54  ;;  %v1754_v54 = vmul.f32 %v5034_v32, %v5042_v46 }
 0x277   : > { %v1591_v47 = vadd.f32 %v1590_v34, %v1562_v44  ;;  %v1800_v34 = vadd.f32 %v1785_v49, %v1784_v55  ;;  %v1792_v55 = vmul.f32 %v1756_v8, %v5012_v15  ;;  %v1790_v40 = vmul.f32 %v1754_v54, %v5042_v46 }
 0x279   : > { %v5055_v60 = vadd.f32 %v1619_v43, %v1591_v47  ;;  %v1801_v33 = vadd.f32 %v1800_v34, %v1786_v13  ;;  %v1678_v43 = vadd.f32 %v1677_v36, %v1648_v42 }
 0x27b   : > { %v1762_v26 = vmul.f32 %v5034_v32, %v5055_v60 }
 0x27c   : > { %v1668_v2 = vpop.f32.mrf.mxu0  ;;  %v1735_v59 = vpop.f32.mrf.mxu2 }
 0x27d   : > { %v1669_v39 = vadd.f32 %v1668_v2, %v1639_v4  ;;  %v1700_v45 = vpop.f32.mrf.mxu1 }
 0x27f   : > { %v1698_v5 = vadd.f32 %v1697_v57, %v1669_v39  ;;  %v1760_v57 = vmul.f32 %v1740_v51, %v5016_v30 }
 0x281   : > { %v5040_v7 = vadd.f32 %v1726_v19, %v1698_v5  ;;  %v1758_v5 = vmul.f32 %v5034_v32, %v5062_v21  ;;  %v1796_v42 = vmul.f32 %v1760_v57, %v5016_v30  ;;  %v1779_v3 = vadd.f32 %v1761_v58, %v1760_v57 }
 0x283   : > { %v1751_v23 = vmul.f32 %v1743_v12, %v5040_v7  ;;  %v1815_v27 = vadd.f32 %v1797_v25, %v1796_v42 }
 0x284   : > { %v1671_v41 = vpop.f32.mrf.mxu0 }
 0x285   : > { %v1672_v22 = vadd.f32 %v1671_v41, %v1642_v20  ;;  %v1703_v37 = vpop.f32.mrf.mxu1  ;;  %v1766_v24 = vadd.f32 %v1765_v6, %v1751_v23  ;;  %v1769_v20 = vadd.f32 %v1753_v63, %v1752_v18  ;;  %v1787_v48 = vmul.f32 %v1751_v23, %v5040_v7 }
 0x286   : > { %v1780_v6 = vadd.f32 %v1779_v3, %v1762_v26  ;;  %v1789_v41 = vmul.f32 %v1753_v63, %v5024_v0 }
 0x287   : > { %v1701_v53 = vadd.f32 %v1700_v45, %v1672_v22  ;;  %1767 = vadd.xlane.f32.xlu1 %v1766_v24  ;;  %v1770_v61 = vadd.f32 %v1769_v20, %v1754_v54  ;;  %v1802_v45 = vadd.f32 %v1801_v33, %v1787_v48 }
 0x289   : > { %v5057_v4 = vadd.f32 %v1729_v28, %v1701_v53  ;;  %v1757_v28 = vmul.f32 %v1741_v16, %v5028_v62 }
 0x28b   : > { %v1755_v19 = vmul.f32 %v1743_v12, %v5057_v4  ;;  %v1774_v44 = vadd.f32 %v1757_v28, %v1756_v8  ;;  %v1793_v49 = vmul.f32 %v1757_v28, %v5028_v62 }
 0x28c   : > { %v1674_v50 = vpop.f32.mrf.mxu0 }
 0x28d   : > { %v1675_v1 = vadd.f32 %v1674_v50, %v1645_v56  ;;  %v1706_v2 = vpop.f32.mrf.mxu1  ;;  %v1771_v39 = vadd.f32 %v1770_v61, %v1755_v19  ;;  %v1798_v56 = vmul.f32 %v1762_v26, %v5055_v60  ;;  %v1775_v23 = vadd.f32 %v1774_v44, %v1758_v5 }
 0x28e   : > { %v1707_v10 = vadd.f32 %v1706_v2, %v1678_v43  ;;  %v1810_v13 = vadd.f32 %v1793_v49, %v1792_v55  ;;  %v1791_v63 = vmul.f32 %v1755_v19, %v5057_v4 }
 0x28f   : > { %v1704_v35 = vadd.f32 %v1703_v37, %v1675_v1  ;;  %1772 = vadd.xlane.f32.xlu2 %v1771_v39  ;;  %1803 = vadd.xlane.f32.xlu1 %v1802_v45  ;;  %v1816_v32 = vadd.f32 %v1815_v27, %v1798_v56 }
 0x290   : > { %v5074_v14 = vadd.f32 %v1735_v59, %v1707_v10 }
 0x291   : > { %v5077_v16 = vadd.f32 %v1732_v31, %v1704_v35  ;;  %v1788_v31 = vmul.f32 %v1752_v18, %v5002_v29 }
 0x292   : > { %v1763_v17 = vmul.f32 %v1743_v12, %v5074_v14 }
 0x293   : > { %v1759_v51 = vmul.f32 %v1743_v12, %v5077_v16  ;;  %v1794_v12 = vmul.f32 %v1758_v5, %v5062_v21  ;;  %v1805_v36 = vadd.f32 %v1789_v41, %v1788_v31 }
 0x294   : > { %v1799_v47 = vmul.f32 %v1763_v17, %v5074_v14  ;;  %v1781_v37 = vadd.f32 %v1780_v6, %v1763_v17 }
 0x295   : > { %v1776_v22 = vadd.f32 %v1775_v23, %v1759_v51  ;;  %v1795_v53 = vmul.f32 %v1759_v51, %v5077_v16  ;;  %v1811_v20 = vadd.f32 %v1810_v13, %v1794_v12  ;;  %v1806_v48 = vadd.f32 %v1805_v36, %v1790_v40 }
 0x296   : > { %v1817_v24 = vadd.f32 %v1816_v32, %v1799_v47 }
 0x297   : > { %1777 = vadd.xlane.f32.xlu0 %v1776_v22  ;;  %1782 = vadd.xlane.f32.xlu2 %v1781_v37  ;;  %v1812_v34 = vadd.f32 %v1811_v20, %v1795_v53  ;;  %v1807_v18 = vadd.f32 %v1806_v48, %v1791_v63 }
 0x298   : > { %1818 = vadd.xlane.f32.xlu1 %v1817_v24 }
 0x29f   : > { %1813 = vadd.xlane.f32.xlu0 %v1812_v34  ;;  %1808 = vadd.xlane.f32.xlu2 %v1807_v18 }
 0x2fa   : > { %v1768_v58 = vpop.xlane.xlu1 %1767 }
 0x2fb   : > { %v1820_v61 = vmul.f32 0.00390625, %v1768_v58 }
 0x2fd   : > { %v1828_v50 = vmul.f32 %v1820_v61, %v1820_v61  ;;  %v1836_v22 = vsub.f32 %v4966_v11, %v1820_v61  ;;  %v1837_v24 = vsub.f32 %v5022_v38, %v1820_v61  ;;  %v1838_v55 = vsub.f32 %v5032_v9, %v1820_v61 }
 0x2fe   : > { %v1839_v12 = vsub.f32 %v5040_v7, %v1820_v61 }
 0x302   : > { %v1773_v33 = vpop.xlane.xlu2 %1772  ;;  %v1804_v57 = vpop.xlane.xlu1 %1803 }
 0x303   : > { %v1824_v43 = vmul.f32 0.00390625, %v1804_v57  ;;  %v5092_v59 = vmul.f32 0.00390625, %v1773_v33 }
 0x305   : > { %v1832_v54 = vsub.f32 %v1824_v43, %v1828_v50  ;;  %v1829_v56 = vmul.f32 %v5092_v59, %v5092_v59 }
 0x307   : > { %v1852_v26 = vadd.f32 1e-05, %v1832_v54 }
 0x309   : > { %2703 = vrsqrt.f32 %v1852_v26  ;;  %vm1862_vm11 = vweird.f32 %v1852_v26 }
 0x30a   : > { %v1778_v28 = vpop.xlane.xlu0 %1777  ;;  %v1783_v1 = vpop.xlane.xlu2 %1782 }
 0x30b   : > { %v1819_v2 = vpop.xlane.xlu1 %1818  ;;  %v5090_v19 = vmul.f32 0.00390625, %v1783_v1  ;;  %v5096_v25 = vmul.f32 0.00390625, %v1778_v28 }
 0x30c   : > { %v1827_v39 = vmul.f32 0.00390625, %v1819_v2 }
 0x30d   : > { %v1831_v45 = vmul.f32 %v5090_v19, %v5090_v19  ;;  %v1830_v17 = vmul.f32 %v5096_v25, %v5096_v25  ;;  %v1848_v50 = vsub.f32 %v5016_v30, %v5090_v19  ;;  %v1849_v28 = vsub.f32 %v5050_v52, %v5090_v19 }
 0x30e   : > { %v1850_v1 = vsub.f32 %v5055_v60, %v5090_v19  ;;  %v1851_v2 = vsub.f32 %v5074_v14, %v5090_v19  ;;  %v1840_v52 = vsub.f32 %v5002_v29, %v5092_v59  ;;  %v1844_v29 = vsub.f32 %v5012_v15, %v5096_v25 }
 0x30f   : > { %v2704_v10 = vpop.eup %2703  ;;  %v1835_v8 = vsub.f32 %v1827_v39, %v1831_v45 }
 0x310   : > { %v1857_v35 = vmul.f32 %v2704_v10, %v1852_v26  ;;  %vm1863_vm0 = vweird.f32 %v2704_v10 }
 0x311   : > { %v1855_v5 = vadd.f32 1e-05, %v1835_v8  ;;  %vm1864_vm5 = vmor %vm1862_vm11, %vm1863_vm0 }
 0x312   : > { %v1814_v42 = vpop.xlane.xlu0 %1813  ;;  %v1809_v44 = vpop.xlane.xlu2 %1808  ;;  %v1858_v3 = vmul.f32 %v2704_v10, %v1857_v35 }
 0x313   : > { %v1826_v27 = vmul.f32 0.00390625, %v1814_v42  ;;  %v1825_v51 = vmul.f32 0.00390625, %v1809_v44  ;;  %2705 = vrsqrt.f32 %v1855_v5  ;;  %vm1892_vm13 = vweird.f32 %v1855_v5 }
 0x314   : > { %v1859_v23 = vmul.f32 0.5, %v1858_v3 }
 0x315   : > { %v1834_v6 = vsub.f32 %v1826_v27, %v1830_v17  ;;  %v1833_v47 = vsub.f32 %v1825_v51, %v1829_v56  ;;  %v1845_v27 = vsub.f32 %v5028_v62, %v5096_v25  ;;  %v1846_v51 = vsub.f32 %v5062_v21, %v5096_v25 }
 0x316   : > { %v1860_v32 = vsub.f32 1.5, %v1859_v23  ;;  %v1847_v23 = vsub.f32 %v5077_v16, %v5096_v25  ;;  %v1843_v25 = vsub.f32 %v5057_v4, %v5092_v59 }
 0x317   : > { %v5103_v41 = vadd.f32 1e-05, %v1834_v6  ;;  %v5105_v49 = vadd.f32 1e-05, %v1833_v47  ;;  %v1841_v6 = vsub.f32 %v5024_v0, %v5092_v59  ;;  %v1842_v47 = vsub.f32 %v5042_v46, %v5092_v59 }
 0x318   : > { %v1861_v37 = vmul.f32 %v2704_v10, %v1860_v32 }
 0x319   : > { %2707 = vrsqrt.f32 %v5103_v41  ;;  %v2706_v31 = vpop.eup %2705  ;;  %vm1882_vm8 = vweird.f32 %v5103_v41  ;;  %vm1872_vm6 = vweird.f32 %v5105_v49 }
 0x31a   : > { %2709 = vrsqrt.f32 %v5105_v49  ;;  %v1865_v40 = vsel %vm1864_vm5, %v2704_v10, %v1861_v37  ;;  %v1887_v53 = vmul.f32 %v2706_v31, %v1855_v5  ;;  %vm1893_vm7 = vweird.f32 %v2706_v31 }
 0x31b   : > { %v1896_v13 = vmul.f32 %v1865_v40, %v1836_v22  ;;  %v1897_v11 = vmul.f32 %v1865_v40, %v1837_v24  ;;  %v1898_v63 = vmul.f32 %v1865_v40, %v1838_v55  ;;  %v1899_v36 = vmul.f32 %v1865_v40, %v1839_v12  ;;  %vm1894_vm14 = vmor %vm1892_vm13, %vm1893_vm7 }
 0x31c   : > { %v1888_v20 = vmul.f32 %v2706_v31, %v1887_v53 }
 0x31d   : > { %v1912_v48 = vmax.f32 %v1896_v13, 0.0  ;;  %v1913_v34 = vmax.f32 %v1897_v11, 0.0  ;;  %v1914_v18 = vmax.f32 %v1898_v63, 0.0  ;;  %v1915_v58 = vmax.f32 %v1899_v36, 0.0 }
 0x31e   : > { %v1889_v9 = vmul.f32 0.5, %v1888_v20 }
 0x31f   : > { %v2708_v38 = vpop.eup %2707  ;;  %1928 = vst [vmem:[%s5115_s9] sm:$0xff] %v1912_v48 }
 0x320   : > { %v2710_v33 = vpop.eup %2709  ;;  %v1877_v7 = vmul.f32 %v2708_v38, %v5103_v41  ;;  %1929 = vst [vmem:[%s5115_s9 + $0x8] sm:$0xff] %v1913_v34  ;;  %v1890_v61 = vsub.f32 1.5, %v1889_v9  ;;  %vm1883_vm1 = vweird.f32 %v2708_v38 }
 0x321   : > { %v1867_v57 = vmul.f32 %v2710_v33, %v5105_v49  ;;  %1930 = vst [vmem:[%s5115_s9 + $0x10] sm:$0xff] %v1914_v18  ;;  %vm1873_vm4 = vweird.f32 %v2710_v33  ;;  %vm1884_vm10 = vmor %vm1882_vm8, %vm1883_vm1 }
 0x322   : > { %v1878_v43 = vmul.f32 %v2708_v38, %v1877_v7  ;;  %1931 = vst [vmem:[%s5115_s9 + $0x18] sm:$0xff] %v1915_v58  ;;  %v1891_v54 = vmul.f32 %v2706_v31, %v1890_v61  ;;  %vm1874_vm2 = vmor %vm1872_vm6, %vm1873_vm4 }
 0x323   : > { %v1868_v26 = vmul.f32 %v2710_v33, %v1867_v57 }
 0x324   : > { %v1879_v39 = vmul.f32 0.5, %v1878_v43  ;;  %v1895_v45 = vsel %vm1894_vm14, %v2706_v31, %v1891_v54 }
 0x325   : > { %v1869_v10 = vmul.f32 0.5, %v1868_v26  ;;  %v1908_v30 = vmul.f32 %v1895_v45, %v1848_v50  ;;  %v1909_v8 = vmul.f32 %v1895_v45, %v1849_v28  ;;  %v1910_v35 = vmul.f32 %v1895_v45, %v1850_v1 }
 0x326   : > { %v1911_v5 = vmul.f32 %v1895_v45, %v1851_v2  ;;  %v1880_v42 = vsub.f32 1.5, %v1879_v39 }
 0x327   : > { %v1870_v56 = vsub.f32 1.5, %v1869_v10  ;;  %v1924_v60 = vmax.f32 %v1908_v30, 0.0  ;;  %v1925_v14 = vmax.f32 %v1909_v8, 0.0  ;;  %v1926_v19 = vmax.f32 %v1910_v35, 0.0 }
 0x328   : > { %v1927_v44 = vmax.f32 %v1911_v5, 0.0  ;;  %v1881_v3 = vmul.f32 %v2708_v38, %v1880_v42 }
 0x329   : > { %v1871_v17 = vmul.f32 %v2710_v33, %v1870_v56  ;;  %1940 = vst [vmem:[%s5115_s9 + $0x60] sm:$0xff] %v1924_v60 }
 0x32a   : > { %1941 = vst [vmem:[%s5115_s9 + $0x68] sm:$0xff] %v1925_v14  ;;  %v1885_v15 = vsel %vm1884_vm10, %v2708_v38, %v1881_v3 }
 0x32b   : > { %v1875_v32 = vsel %vm1874_vm2, %v2710_v33, %v1871_v17  ;;  %1942 = vst [vmem:[%s5115_s9 + $0x70] sm:$0xff] %v1926_v19  ;;  %v1904_v62 = vmul.f32 %v1885_v15, %v1844_v29  ;;  %v1905_v21 = vmul.f32 %v1885_v15, %v1845_v27  ;;  %v1906_v41 = vmul.f32 %v1885_v15, %v1846_v51 }
 0x32c   : > { %v1907_v16 = vmul.f32 %v1885_v15, %v1847_v23  ;;  %1943 = vst [vmem:[%s5115_s9 + $0x78] sm:$0xff] %v1927_v44  ;;  %v1900_v0 = vmul.f32 %v1875_v32, %v1840_v52  ;;  %v1901_v49 = vmul.f32 %v1875_v32, %v1841_v6  ;;  %v1902_v31 = vmul.f32 %v1875_v32, %v1842_v47 }
 0x32d   : > { %v1920_v46 = vmax.f32 %v1904_v62, 0.0  ;;  %v1921_v22 = vmax.f32 %v1905_v21, 0.0  ;;  %v1922_v37 = vmax.f32 %v1906_v41, 0.0  ;;  %v1903_v55 = vmul.f32 %v1875_v32, %v1843_v25 }
 0x32e   : > { %v1923_v24 = vmax.f32 %v1907_v16, 0.0  ;;  %v1916_v4 = vmax.f32 %v1900_v0, 0.0  ;;  %v1917_v59 = vmax.f32 %v1901_v49, 0.0  ;;  %v1918_v12 = vmax.f32 %v1902_v31, 0.0 }
 0x32f   : > { %1936 = vst [vmem:[%s5115_s9 + $0x40] sm:$0xff] %v1920_v46  ;;  %v1919_v40 = vmax.f32 %v1903_v55, 0.0 }
 0x330   : > { %1937 = vst [vmem:[%s5115_s9 + $0x48] sm:$0xff] %v1921_v22 }
 0x331   : > { %1938 = vst [vmem:[%s5115_s9 + $0x50] sm:$0xff] %v1922_v37 }
 0x332   : > { %1939 = vst [vmem:[%s5115_s9 + $0x58] sm:$0xff] %v1923_v24 }
 0x333   : > { %1932 = vst [vmem:[%s5115_s9 + $0x20] sm:$0xff] %v1916_v4 }
 0x334   : > { %1933 = vst [vmem:[%s5115_s9 + $0x28] sm:$0xff] %v1917_v59 }
 0x335   : > { %1934 = vst [vmem:[%s5115_s9 + $0x30] sm:$0xff] %v1918_v12 }
 0x336   : > { %1935 = vst [vmem:[%s5115_s9 + $0x38] sm:$0xff] %v1919_v40 }
 0x337   : > { %2832 = shalt.err (!%p2829_p1)
}
 0x338   : > { %s3009_s5 = smov 512   ;;  %s3010_s21 = smov 32  }
 0x339   : > { %2150 = dma.vmem_to_hbm [thread:$0]  (%p3116_p6), %s1961_s3, 2048, %s1963_s12, %s1945_s2, %s3009_s5, %s3009_s5, %s3010_s21  }
 0x33a PF: > { %s5738_s9 = sld [smem:[#allocation14_spill]]  ;;  %p2170_p2 = scmp.ge.s32.totalorder %s2959_s25, 2 }
 0x33c   : > { %p2164_p7 = pnand %p2170_p2, %p3122_p10 }
 0x33e   : > { %p2165_p8 = pneg %p2164_p7 }
 0x340   : > { %s1977_s15 = sand.u32 1, %s5738_s9  }
 0x341   : > { %s1978_s30 = scalar_lea.sflag [#allocation5], %s1977_s15 }
 0x342   : > { %2902 = dma.done.wait (%p2165_p8), %s1978_s30, 2048  }
 0x343   : > { %2904 = vsyncadd (%p2165_p8), %s1978_s30, 4294965248  ;;  %s22_s25 = sadd.s32 1, %s2959_s25   ;;  %s5741_s12 = sld [smem:[#allocation15_spill]] }
 0x344   : > { %p5189_p3 = scmp.ge.s32.totalorder %s22_s25, 6   ;;  %s5742_s24 = sld [smem:[#allocation24_spill]] }
 0x345   : > { %s5743_s22 = sld [smem:[#allocation18_spill]]  ;;  %s5746_s13 = smov %s2915_s14 }
 0x346   : > { %s5744_s6 = sld [smem:[#allocation22_spill]]  ;;  %s5747_s14 = smov %s3185_s29 }
 0x347   : > { %s5745_s3 = sld [smem:[#allocation23_spill]]  ;;  %s5748_s15 = smov %s2923_s16 }
 0x348   : > { %s5749_s16 = smov %s2927_s17  ;;  %s5751_s18 = smov %s2935_s19 }
 0x349   : > { %s5752_s19 = smov %s2939_s20  ;;  %s5753_s20 = smov %s3180_s10 }
 0x34a   : > { %s5750_s17 = smov %s5742_s24  ;;  %s5754_s21 = smov %s2951_s23 }
 0x34b   :  { %21 = sbr.rel (!%p5189_p3) target bundleno = 16 (0x10), region = 94 }
 0x34c   : > { %s5755_s23 = smov %s5744_s6 }
 0x34d   : > { %s5756_s24 = smov %s5745_s3 }
 0x350   :  { %1984 = vsyncpa [#allocation4], 1 }
 0x351   :  { %1986 = vsyncpa [#allocation4 + $0x1], 1 }
 0x352   :  { %1987 = vsyncpa [#allocation7], 1 }
 0x353   :  { %1989 = vsyncpa [#allocation7 + $0x1], 1 }
 0x354   :  { %1990 = vsyncpa [#allocation5], 1 }
 0x355   :  { %1992 = vsyncpa [#allocation5 + $0x1], 1 }

</bundles_post_ra>
